<compile_context>
chip_gen: v5e
topology: v5e:2x2
jax: 0.10.0
libtpu: 0.0.40
codegen_flags: <defaults>
</compile_context>

<pallas_src>
import functools

import jax
import jax.numpy as jnp
from jax.experimental import pallas as pl
from jax.experimental.pallas import tpu as pltpu

LANE = 128
_MB = 1 << 20


def _round_up(x, m):
    return (x + m - 1) // m * m


def _pick_tile(n_pad, cap, min_tiles=1):
    """Largest multiple of 128 that divides n_pad, is <= cap, and leaves >= min_tiles tiles."""
    best = LANE
    t = LANE
    limit = min(cap, n_pad)
    while t <= limit:
        if n_pad % t == 0 and (n_pad // t) >= min_tiles:
            best = t
        t += LANE
    return best


# ----------------------------------------------------------------------------
# Pallas kernels
# ----------------------------------------------------------------------------
def input_proj_kernel(x_ref, w_ref, o_ref):
    """First-layer feature projection:  XW_1 = X @ W_1 (bf16 out, f32 acc)."""
    o_ref[...] = jnp.dot(
        x_ref[...], w_ref[...], preferred_element_type=jnp.float32
    ).astype(jnp.bfloat16)


def _propagate(a_ref, xw_ref, acc_ref, tk, xw_resident):
    """acc += A[i, k] @ XW[k]   (bf16 MXU inputs, f32 accumulation)."""
    k = pl.program_id(1)

    @pl.when(k == 0)
    def _():
        acc_ref[...] = jnp.zeros_like(acc_ref)

    if xw_resident:
        start = pl.multiple_of(k * tk, tk)       # XW resident in VMEM; slice the k block
        xw_k = xw_ref[pl.ds(start, tk), :]
    else:
        xw_k = xw_ref[...]                       # streamed (tk, fp) block
    acc_ref[...] += jnp.dot(a_ref[...], xw_k, preferred_element_type=jnp.float32)


def gcn_mid_kernel(a_ref, xw_ref, b_ref, wcomb_ref, logits_in_ref,
                   xw_next_ref, logits_out_ref, acc_ref, *, tk, c_pad, xw_resident):
    """GCN layer l (not last):
         h        = relu(A @ XW_l + b_l)                (never written to HBM)
         [dz|dx]  = h @ [LW_l | W_{l+1}]                (single lane-dense MXU dot)
         logits  += dz ;  XW_{l+1} = dx
    """
    _propagate(a_ref, xw_ref, acc_ref, tk, xw_resident)

    @pl.when(pl.program_id(1) == pl.num_programs(1) - 1)
    def _():
        h = jnp.maximum(acc_ref[...] + b_ref[...], 0.0)
        hb = h.astype(jnp.bfloat16)
        zc = jnp.dot(hb, wcomb_ref[...], preferred_element_type=jnp.float32)
        logits_out_ref[...] = logits_in_ref[...] + zc[:, :c_pad]
        xw_next_ref[...] = zc[:, c_pad:].astype(jnp.bfloat16)


def gcn_last_kernel(a_ref, xw_ref, b_ref, lw_ref, logits_in_ref, linb_ref,
                    logp_ref, acc_ref, *, tk, num_classes, xw_resident):
    """Last GCN layer fused with classifier bias + masked log_softmax."""
    _propagate(a_ref, xw_ref, acc_ref, tk, xw_resident)

    @pl.when(pl.program_id(1) == pl.num_programs(1) - 1)
    def _():
        h = jnp.maximum(acc_ref[...] + b_ref[...], 0.0)
        hb = h.astype(jnp.bfloat16)
        z = logits_in_ref[...] + jnp.dot(
            hb, lw_ref[...], preferred_element_type=jnp.float32)
        z = z + linb_ref[...]
        # Mask lane-padding class columns out of the softmax.
        mask = jax.lax.broadcasted_iota(jnp.int32, z.shape, 1) < num_classes
        z = jnp.where(mask, z, -1e30)
        m = jnp.max(z, axis=-1, keepdims=True)
        lse = jnp.log(jnp.sum(jnp.exp(z - m), axis=-1, keepdims=True))
        logp_ref[...] = z - m - lse


# ----------------------------------------------------------------------------
# pallas_call wrappers
# ----------------------------------------------------------------------------
def input_projection(x_pad, w_pad, tm):
    n_pad, f_in = x_pad.shape
    f_out = w_pad.shape[1]
    return pl.pallas_call(
        input_proj_kernel,
        out_shape=jax.ShapeDtypeStruct((n_pad, f_out), jnp.bfloat16),
        grid_spec=pltpu.PrefetchScalarGridSpec(
            num_scalar_prefetch=0,
            grid=(n_pad // tm,),
            in_specs=[pl.BlockSpec((tm, f_in), lambda i: (i, 0)),
                      pl.BlockSpec((f_in, f_out), lambda i: (0, 0))],
            out_specs=pl.BlockSpec((tm, f_out), lambda i: (i, 0))),
        compiler_params=pltpu.CompilerParams(
            dimension_semantics=("parallel",)),
        cost_estimate=pl.CostEstimate(
            flops=2 * n_pad * f_in * f_out,
            transcendentals=0,
            bytes_accessed=2 * (x_pad.size + w_pad.size + n_pad * f_out)),
    )(x_pad, w_pad)


def gcn_layer(a_hat, xw, b, w_epi, logits_in, *, lin_b=None, num_classes=None,
              c_pad, tm, tk, xw_resident):
    """One GCN layer as a single gridded pallas_call.

    w_epi is [LW_l | W_{l+1}] for mid layers (epilogue dot is split into logits
    increment and the next-layer projection) and LW_{L-1} for the last layer.
    """
    n_pad = a_hat.shape[0]
    fp = xw.shape[1]
    w_out = w_epi.shape[1]
    grid = (n_pad // tm, n_pad // tk)
    is_last = lin_b is not None

    if xw_resident:
        xw_spec = pl.BlockSpec((n_pad, fp), lambda i, k: (0, 0))   # DMA'd once, resident
        xw_hbm_bytes = n_pad * fp * 2
    else:
        xw_spec = pl.BlockSpec((tk, fp), lambda i, k: (k, 0))      # streamed per k block
        xw_hbm_bytes = (n_pad // tm) * n_pad * fp * 2

    in_specs = [
        pl.BlockSpec((tm, tk), lambda i, k: (i, k)),        # A_hat tile
        xw_spec,                                            # XW_l
        pl.BlockSpec((1, fp), lambda i, k: (0, 0)),         # bias
        pl.BlockSpec((fp, w_out), lambda i, k: (0, 0)),     # [LW_l | W_{l+1}] or LW_{L-1}
        pl.BlockSpec((tm, c_pad), lambda i, k: (i, 0)),     # running logits (donated)
    ]
    scratch = [pltpu.VMEM((tm, fp), jnp.float32)]

    # VMEM budget (double-buffered pipeline), kept well under v7x's 64 MiB physical.
    xw_vmem = 2 * (n_pad if xw_resident else tk) * fp * 2
    vmem_bytes = (2 * tm * tk * 2            # A_hat tiles (bf16, double buffered)
                  + xw_vmem                  # XW_l
                  + 2 * fp * 4               # bias
                  + 2 * fp * w_out * 2       # epilogue weight
                  + 2 * tm * c_pad * 4       # logits_in
                  + tm * fp * 4)             # f32 accumulator scratch

    flops = 2 * n_pad * n_pad * fp + 2 * n_pad * fp * w_out
    bytes_accessed = (2 * a_hat.size + xw_hbm_bytes + 2 * w_epi.size
                      + 4 * b.size + 4 * logits_in.size)

    if is_last:
        in_specs.append(pl.BlockSpec((1, c_pad), lambda i, k: (0, 0)))    # lin bias
        out_shape = jax.ShapeDtypeStruct((n_pad, c_pad), jnp.float32)
        out_specs = pl.BlockSpec((tm, c_pad), lambda i, k: (i, 0))
        kernel = functools.partial(gcn_last_kernel, tk=tk,
                                   num_classes=num_classes, xw_resident=xw_resident)
        operands = (a_hat, xw, b, w_epi, logits_in, lin_b)
        io_aliases = {4: 0}            # donate running logits buffer -> logp output
        transcendentals = n_pad * c_pad
        vmem_bytes += 2 * tm * c_pad * 4
        bytes_accessed += 4 * n_pad * c_pad
    else:
        fnp = w_out - c_pad
        out_shape = (jax.ShapeDtypeStruct((n_pad, fnp), jnp.bfloat16),
                     jax.ShapeDtypeStruct((n_pad, c_pad), jnp.float32))
        out_specs = (pl.BlockSpec((tm, fnp), lambda i, k: (i, 0)),
                     pl.BlockSpec((tm, c_pad), lambda i, k: (i, 0)))
        kernel = functools.partial(gcn_mid_kernel, tk=tk, c_pad=c_pad,
                                   xw_resident=xw_resident)
        operands = (a_hat, xw, b, w_epi, logits_in)
        io_aliases = {4: 1}            # donate running logits buffer -> logits output
        transcendentals = 0
        vmem_bytes += 2 * tm * fnp * 2 + 2 * tm * c_pad * 4
        bytes_accessed += 2 * n_pad * fnp + 4 * n_pad * c_pad

    vmem_limit = min(max(int(vmem_bytes * 1.3) + 4 * _MB, 32 * _MB), 56 * _MB)

    return pl.pallas_call(
        kernel,
        out_shape=out_shape,
        grid_spec=pltpu.PrefetchScalarGridSpec(
            num_scalar_prefetch=0,
            grid=grid,
            in_specs=in_specs,
            out_specs=out_specs,
            scratch_shapes=scratch),
        compiler_params=pltpu.CompilerParams(
            dimension_semantics=("parallel", "arbitrary"),
            vmem_limit_bytes=vmem_limit),
        input_output_aliases=io_aliases,
        cost_estimate=pl.CostEstimate(
            flops=flops, transcendentals=transcendentals,
            bytes_accessed=bytes_accessed),
    )(*operands)


# ----------------------------------------------------------------------------
# Dense normalized adjacency (GCN normalization, self-loops added)
# ----------------------------------------------------------------------------
def build_normalized_adjacency(edge_index, edge_attr, num_nodes, num_nodes_pad):
    row, col = edge_index[0], edge_index[1]          # messages flow row -> col
    loop = jnp.arange(num_nodes, dtype=row.dtype)
    row = jnp.concatenate([row, loop])
    col = jnp.concatenate([col, loop])
    ew = jnp.concatenate([edge_attr.astype(jnp.float32),
                          jnp.ones((num_nodes,), jnp.float32)])

    deg = jnp.zeros((num_nodes,), jnp.float32).at[col].add(ew)
    dinv = jnp.where(deg > 0.0, jax.lax.rsqrt(deg), 0.0)
    norm = dinv[row] * ew * dinv[col]

    a_hat = jnp.zeros((num_nodes_pad, num_nodes_pad), jnp.float32)
    a_hat = a_hat.at[col, row].add(norm)             # pad rows/cols stay zero
    return a_hat


# ----------------------------------------------------------------------------
# JKNet forward (proj kernel + one kernel per GCN layer; JK concat / final
# Linear / log_softmax folded into the layer kernels)
# ----------------------------------------------------------------------------
@functools.partial(jax.jit, static_argnames=("max_tm", "max_tk", "xw_resident"))
def jknet_forward(x, edge_index, edge_attr, params, *, max_tm=512, max_tk=2048,
                  xw_resident=None):
    n, f_in = x.shape
    num_classes = params["lin_b"].shape[0]
    hidden = [w.shape[1] for (w, _) in params["gcn"]]

    # Pad N only to lane granularity; tiles divide n_pad exactly (no quadratic waste).
    n_pad = _round_up(n, LANE)
    c_pad = _round_up(num_classes, LANE)
    f_in_pad = _round_up(f_in, LANE)
    hid_pad = [_round_up(h, LANE) for h in hidden]

    # Row tile: <=512 and >=2 row tiles (megacore balance on v7x).
    tm = _pick_tile(n_pad, max_tm, min_tiles=2)
    # Reduction tile: as large as possible (HBM-bound; fewer grid steps).
    tk = _pick_tile(n_pad, max_tk, min_tiles=1)

    a_hat = build_normalized_adjacency(
        edge_index, edge_attr, n, n_pad).astype(jnp.bfloat16)
    x_pad = jnp.pad(x, ((0, n_pad - n), (0, f_in_pad - f_in))).astype(jnp.bfloat16)

    # Pad / cast parameters (zero padding preserves the math exactly).
    in_dims = [f_in] + hidden
    in_pads = [f_in_pad] + hid_pad
    w_pads, b_pads, lw_pads = [], [], []
    off = 0
    for li, (w, b) in enumerate(params["gcn"]):
        w_pads.append(jnp.pad(
            w, ((0, in_pads[li] - in_dims[li]),
                (0, hid_pad[li] - hidden[li]))).astype(jnp.bfloat16))
        b_pads.append(jnp.pad(b, (0, hid_pad[li] - hidden[li]))
                      .astype(jnp.float32).reshape(1, -1))
        lw_l = params["lin_w"][off:off + hidden[li], :]
        lw_pads.append(jnp.pad(
            lw_l, ((0, hid_pad[li] - hidden[li]),
                   (0, c_pad - num_classes))).astype(jnp.bfloat16))
        off += hidden[li]
    lin_b_pad = jnp.pad(params["lin_b"], (0, c_pad - num_classes)) \
        .astype(jnp.float32).reshape(1, -1)

    # XW_1 = X @ W_1 (computed once, hoisted out of the tiled propagation).
    xw = input_projection(x_pad, w_pads[0], tm)
    logits = jnp.zeros((n_pad, c_pad), jnp.float32)

    num_layers = len(params["gcn"])
    logp = None
    for li in range(num_layers):
        if xw_resident is None:
            resident = (4 * xw.size) <= 24 * _MB   # 2 VMEM buffers of bf16 XW
        else:
            resident = xw_resident
        if li == num_layers - 1:
            logp = gcn_layer(a_hat, xw, b_pads[li], lw_pads[li], logits,
                             lin_b=lin_b_pad, num_classes=num_classes,
                             c_pad=c_pad, tm=tm, tk=tk, xw_resident=resident)
        else:
            # Fuse LW_l and W_{l+1} into one lane-dense epilogue weight.
            wcomb = jnp.concatenate([lw_pads[li], w_pads[li + 1]], axis=1)
            xw, logits = gcn_layer(a_hat, xw, b_pads[li], wcomb, logits,
                                   c_pad=c_pad, tm=tm, tk=tk, xw_resident=resident)

    return logp[:n, :num_classes]


# ----------------------------------------------------------------------------
# Pure-JAX reference (same bf16 MXU-input / f32-accumulate numerics)
# ----------------------------------------------------------------------------
def jknet_reference(x, edge_index, edge_attr, params):
    n = x.shape[0]
    a = build_normalized_adjacency(edge_index, edge_attr, n, n).astype(jnp.bfloat16)
    h = x.astype(jnp.bfloat16)
    outs = []
    for (w, b) in params["gcn"]:
        xw = jnp.dot(h, w.astype(jnp.bfloat16), preferred_element_type=jnp.float32)
        h32 = jax.nn.relu(
            jnp.dot(a, xw.astype(jnp.bfloat16), preferred_element_type=jnp.float32) + b)
        h = h32.astype(jnp.bfloat16)
        outs.append(h)
    jk = jnp.concatenate(outs, axis=1)
    z = jnp.dot(jk, params["lin_w"].astype(jnp.bfloat16),
                preferred_element_type=jnp.float32) + params["lin_b"]
    return jax.nn.log_softmax(z, axis=-1)


# ----------------------------------------------------------------------------
# Deterministic parameter init (shapes follow JKNet.__init__)
# ----------------------------------------------------------------------------
def init_params(key, num_features, hidden, num_classes):
    dims = [num_features] + hidden
    params = {"gcn": []}
    for fin, fout in zip(dims[:-1], dims[1:]):
        key, kw = jax.random.split(key)
        scale = (6.0 / (fin + fout)) ** 0.5
        w = jax.random.uniform(kw, (fin, fout), jnp.float32, -scale, scale)
        b = jnp.zeros((fout,), jnp.float32)
        params["gcn"].append((w, b))
    key, kw = jax.random.split(key)
    fin = sum(hidden)
    scale = (6.0 / (fin + num_classes)) ** 0.5
    params["lin_w"] = jax.random.uniform(kw, (fin, num_classes), jnp.float32,
                                         -scale, scale)
    params["lin_b"] = jnp.zeros((num_classes,), jnp.float32)
    return params


if __name__ == "__main__":
    key = jax.random.PRNGKey(0)

    num_nodes = 384            # -> 3 row tiles of 128
    num_features = 16
    hidden = [64, 64]
    num_classes = 7
    num_edges = 2048

    k_x, k_src, k_dst, k_w, k_p = jax.random.split(key, 5)
    x = jax.random.normal(k_x, (num_nodes, num_features), jnp.float32)
    src = jax.random.randint(k_src, (num_edges,), 0, num_nodes)
    dst = jax.random.randint(k_dst, (num_edges,), 0, num_nodes)
    edge_index = jnp.stack([src, dst], axis=0)                     # [2, E]
    edge_attr = jax.random.uniform(k_w, (num_edges,), jnp.float32, 0.1, 1.0)

    params = init_params(k_p, num_features, hidden, num_classes)

    ref = jknet_reference(x, edge_index, edge_attr, params)

    # Default config: large tk (single k step at this size), XW resident in VMEM.
    out = jknet_forward(x, edge_index, edge_attr, params)
    jax.block_until_ready(out)
    assert out.shape == (num_nodes, num_classes)
    row_sums = jnp.sum(jnp.exp(out), axis=1)
    assert bool(jnp.all(jnp.abs(row_sums - 1.0) < 1e-3))
    max_err = float(jnp.max(jnp.abs(out - ref)))
    assert max_err < 5e-2, f"default path: max |err| vs reference = {max_err}"

    # Forced small reduction tile + streamed XW: exercises the multi-step
    # k-accumulation loop and the non-resident fallback path.
    out2 = jknet_forward(x, edge_index, edge_attr, params,
                         max_tk=128, xw_resident=False)
    jax.block_until_ready(out2)
    max_err2 = float(jnp.max(jnp.abs(out2 - ref)))
    assert max_err2 < 5e-2, f"streamed path: max |err| vs reference = {max_err2}"

    print("KERNEL_OK")
</pallas_src>

<mosaic_0001>
module attributes {stable_mosaic.version = 11 : i64} {
  func.func @gcn_mid_kernel(%arg0: i32, %arg1: i32, %arg2: memref<128x384xbf16, #tpu.memory_space<vmem>>, %arg3: memref<384x128xbf16, #tpu.memory_space<vmem>>, %arg4: memref<1x128xf32, #tpu.memory_space<vmem>>, %arg5: memref<128x256xbf16, #tpu.memory_space<vmem>>, %arg6: memref<128x128xf32, #tpu.memory_space<vmem>>, %arg7: memref<128x128xbf16, #tpu.memory_space<vmem>>, %arg8: memref<128x128xf32, #tpu.memory_space<vmem>>, %arg9: memref<128x128xf32, #tpu.memory_space<vmem>>) attributes {dimension_semantics = [#tpu.dimension_semantics<parallel>, #tpu.dimension_semantics<arbitrary>], iteration_bounds = array<i64: 3, 1>, scalar_prefetch = 0 : i64, scratch_operands = 1 : i64, tpu.core_type = #tpu.core_type<tc>, window_params = [{transform_indices = @transform_0, window_bounds = array<i64: 128, 384>}, {pipeline_mode = #tpu.pipeline_mode<synchronous>, transform_indices = @transform_1, window_bounds = array<i64: 384, 128>}, {pipeline_mode = #tpu.pipeline_mode<synchronous>, transform_indices = @transform_2, window_bounds = array<i64: 1, 128>}, {pipeline_mode = #tpu.pipeline_mode<synchronous>, transform_indices = @transform_3, window_bounds = array<i64: 128, 256>}, {transform_indices = @transform_4, window_bounds = array<i64: 128, 128>}, {transform_indices = @transform_5, window_bounds = array<i64: 128, 128>}, {transform_indices = @transform_6, window_bounds = array<i64: 128, 128>}]} {
    %c0_i32 = arith.constant 0 : i32
    %0 = arith.cmpi eq, %arg1, %c0_i32 : i32
    %1 = arith.extui %0 : i1 to i32
    %c0_i32_0 = arith.constant 0 : i32
    %2 = arith.cmpi ne, %1, %c0_i32_0 : i32
    scf.if %2 {
      %cst_9 = arith.constant 0.000000e+00 : f32
      %15 = vector.broadcast %cst_9 : f32 to vector<128x128xf32>
      %c0_10 = arith.constant 0 : index
      %c0_11 = arith.constant 0 : index
      %16 = vector.load %arg9[%c0_10, %c0_11] : memref<128x128xf32, #tpu.memory_space<vmem>>, vector<128x128xf32>
      tpu.vector_store %arg9[%c0_10, %c0_11], %15 {strides = array<i32>} : memref<128x128xf32, #tpu.memory_space<vmem>>, vector<128x128xf32>,
    } else {
    }
    %c384_i32 = arith.constant 384 : i32
    %3 = arith.muli %arg1, %c384_i32 : i32
    %4 = tpu.assume_multiple %3, 384 : i32
    %5 = arith.index_cast %4 : i32 to index
    %c0 = arith.constant 0 : index
    %6 = vector.load %arg3[%5, %c0] : memref<384x128xbf16, #tpu.memory_space<vmem>>, vector<384x128xbf16>
    %c0_1 = arith.constant 0 : index
    %c0_2 = arith.constant 0 : index
    %7 = vector.load %arg9[%c0_1, %c0_2] : memref<128x128xf32, #tpu.memory_space<vmem>>, vector<128x128xf32>
    %c0_3 = arith.constant 0 : index
    %c0_4 = arith.constant 0 : index
    %8 = vector.load %arg2[%c0_3, %c0_4] : memref<128x384xbf16, #tpu.memory_space<vmem>>, vector<128x384xbf16>
    %cst = arith.constant dense<0.000000e+00> : vector<128x128xf32>
    %9 = tpu.matmul %8, %6, %cst {dimension_numbers = #tpu.dot_dimension_numbers<[1], [0], [0], [1], [0, 0, 1, 1], [], []>} : vector<128x384xbf16>, vector<384x128xbf16>, vector<128x128xf32> -> vector<128x128xf32>
    %10 = arith.addf %7, %9 : vector<128x128xf32>
    %c0_5 = arith.constant 0 : index
    %c0_6 = arith.constant 0 : index
    %11 = vector.load %arg9[%c0_5, %c0_6] : memref<128x128xf32, #tpu.memory_space<vmem>>, vector<128x128xf32>
    tpu.vector_store %arg9[%c0_5, %c0_6], %10 {strides = array<i32>} : memref<128x128xf32, #tpu.memory_space<vmem>>, vector<128x128xf32>,
    %c0_i32_7 = arith.constant 0 : i32
    %12 = arith.cmpi eq, %arg1, %c0_i32_7 : i32
    %13 = arith.extui %12 : i1 to i32
    %c0_i32_8 = arith.constant 0 : i32
    %14 = arith.cmpi ne, %13, %c0_i32_8 : i32
    scf.if %14 {
      %c0_9 = arith.constant 0 : index
      %c0_10 = arith.constant 0 : index
      %15 = vector.load %arg9[%c0_9, %c0_10] : memref<128x128xf32, #tpu.memory_space<vmem>>, vector<128x128xf32>
      %c0_11 = arith.constant 0 : index
      %c0_12 = arith.constant 0 : index
      %16 = vector.load %arg4[%c0_11, %c0_12] : memref<1x128xf32, #tpu.memory_space<vmem>>, vector<1x128xf32>
      %17 = vector.broadcast %16 : vector<1x128xf32> to vector<128x128xf32>
      %18 = arith.addf %15, %17 : vector<128x128xf32>
      %cst_13 = arith.constant 0.000000e+00 : f32
      %19 = vector.broadcast %cst_13 : f32 to vector<128x128xf32>
      %20 = arith.maximumf %18, %19 : vector<128x128xf32>
      %21 = arith.truncf %20 : vector<128x128xf32> to vector<128x128xbf16>
      %c0_14 = arith.constant 0 : index
      %c0_15 = arith.constant 0 : index
      %22 = vector.load %arg5[%c0_14, %c0_15] : memref<128x256xbf16, #tpu.memory_space<vmem>>, vector<128x256xbf16>
      %cst_16 = arith.constant dense<0.000000e+00> : vector<128x256xf32>
      %23 = tpu.matmul %21, %22, %cst_16 {dimension_numbers = #tpu.dot_dimension_numbers<[1], [0], [0], [1], [0, 0, 1, 1], [], []>} : vector<128x128xbf16>, vector<128x256xbf16>, vector<128x256xf32> -> vector<128x256xf32>
      %c0_17 = arith.constant 0 : index
      %c0_18 = arith.constant 0 : index
      %24 = vector.load %arg6[%c0_17, %c0_18] : memref<128x128xf32, #tpu.memory_space<vmem>>, vector<128x128xf32>
      %25 = vector.extract_strided_slice %23 {offsets = [0, 0], sizes = [128, 128], strides = [1, 1]} : vector<128x256xf32> to vector<128x128xf32>
      %26 = arith.addf %24, %25 : vector<128x128xf32>
      %c0_19 = arith.constant 0 : index
      %c0_20 = arith.constant 0 : index
      %27 = vector.load %arg8[%c0_19, %c0_20] : memref<128x128xf32, #tpu.memory_space<vmem>>, vector<128x128xf32>
      tpu.vector_store %arg8[%c0_19, %c0_20], %26 {strides = array<i32>} : memref<128x128xf32, #tpu.memory_space<vmem>>, vector<128x128xf32>,
      %28 = vector.extract_strided_slice %23 {offsets = [0, 128], sizes = [128, 128], strides = [1, 1]} : vector<128x256xf32> to vector<128x128xf32>
      %29 = arith.truncf %28 : vector<128x128xf32> to vector<128x128xbf16>
      %c0_21 = arith.constant 0 : index
      %c0_22 = arith.constant 0 : index
      %30 = vector.load %arg7[%c0_21, %c0_22] : memref<128x128xbf16, #tpu.memory_space<vmem>>, vector<128x128xbf16>
      tpu.vector_store %arg7[%c0_21, %c0_22], %29 {strides = array<i32>} : memref<128x128xbf16, #tpu.memory_space<vmem>>, vector<128x128xbf16>,
    } else {
    }
    return
  }
  func.func @transform_0(%arg0: i32, %arg1: i32) -> (i32, i32) {
    %c0_i32 = arith.constant 0 : i32
    return %arg0, %arg1 : i32, i32
  }
  func.func @transform_1(%arg0: i32, %arg1: i32) -> (i32, i32) {
    %c0_i32 = arith.constant 0 : i32
    %c0_i32_0 = arith.constant 0 : i32
    %c0_i32_1 = arith.constant 0 : i32
    return %c0_i32, %c0_i32_0 : i32, i32
  }
  func.func @transform_2(%arg0: i32, %arg1: i32) -> (i32, i32) {
    %c0_i32 = arith.constant 0 : i32
    %c0_i32_0 = arith.constant 0 : i32
    %c0_i32_1 = arith.constant 0 : i32
    return %c0_i32, %c0_i32_0 : i32, i32
  }
  func.func @transform_3(%arg0: i32, %arg1: i32) -> (i32, i32) {
    %c0_i32 = arith.constant 0 : i32
    %c0_i32_0 = arith.constant 0 : i32
    %c0_i32_1 = arith.constant 0 : i32
    return %c0_i32, %c0_i32_0 : i32, i32
  }
  func.func @transform_4(%arg0: i32, %arg1: i32) -> (i32, i32) {
    %c0_i32 = arith.constant 0 : i32
    %c0_i32_0 = arith.constant 0 : i32
    return %arg0, %c0_i32 : i32, i32
  }
  func.func @transform_5(%arg0: i32, %arg1: i32) -> (i32, i32) {
    %c0_i32 = arith.constant 0 : i32
    %c0_i32_0 = arith.constant 0 : i32
    return %arg0, %c0_i32 : i32, i32
  }
  func.func @transform_6(%arg0: i32, %arg1: i32) -> (i32, i32) {
    %c0_i32 = arith.constant 0 : i32
    %c0_i32_0 = arith.constant 0 : i32
    return %arg0, %c0_i32 : i32, i32
  }
}

module attributes {stable_mosaic.version = 11 : i64} {
  func.func @input_proj_kernel(%arg0: i32, %arg1: memref<128x128xbf16, #tpu.memory_space<vmem>>, %arg2: memref<128x128xbf16, #tpu.memory_space<vmem>>, %arg3: memref<128x128xbf16, #tpu.memory_space<vmem>>) attributes {dimension_semantics = [#tpu.dimension_semantics<parallel>], iteration_bounds = array<i64: 3>, scalar_prefetch = 0 : i64, scratch_operands = 0 : i64, tpu.core_type = #tpu.core_type<tc>, window_params = [{transform_indices = @transform_0, window_bounds = array<i64: 128, 128>}, {pipeline_mode = #tpu.pipeline_mode<synchronous>, transform_indices = @transform_1, window_bounds = array<i64: 128, 128>}, {transform_indices = @transform_2, window_bounds = array<i64: 128, 128>}]} {
    %c0 = arith.constant 0 : index
    %c0_0 = arith.constant 0 : index
    %0 = vector.load %arg1[%c0, %c0_0] : memref<128x128xbf16, #tpu.memory_space<vmem>>, vector<128x128xbf16>
    %c0_1 = arith.constant 0 : index
    %c0_2 = arith.constant 0 : index
    %1 = vector.load %arg2[%c0_1, %c0_2] : memref<128x128xbf16, #tpu.memory_space<vmem>>, vector<128x128xbf16>
    %cst = arith.constant dense<0.000000e+00> : vector<128x128xf32>
    %2 = tpu.matmul %0, %1, %cst {dimension_numbers = #tpu.dot_dimension_numbers<[1], [0], [0], [1], [0, 0, 1, 1], [], []>} : vector<128x128xbf16>, vector<128x128xbf16>, vector<128x128xf32> -> vector<128x128xf32>
    %3 = arith.truncf %2 : vector<128x128xf32> to vector<128x128xbf16>
    %c0_3 = arith.constant 0 : index
    %c0_4 = arith.constant 0 : index
    %4 = vector.load %arg3[%c0_3, %c0_4] : memref<128x128xbf16, #tpu.memory_space<vmem>>, vector<128x128xbf16>
    tpu.vector_store %arg3[%c0_3, %c0_4], %3 {strides = array<i32>} : memref<128x128xbf16, #tpu.memory_space<vmem>>, vector<128x128xbf16>,
    return
  }
  func.func @transform_0(%arg0: i32) -> (i32, i32) {
    %c0_i32 = arith.constant 0 : i32
    %c0_i32_0 = arith.constant 0 : i32
    return %arg0, %c0_i32 : i32, i32
  }
  func.func @transform_1(%arg0: i32) -> (i32, i32) {
    %c0_i32 = arith.constant 0 : i32
    %c0_i32_0 = arith.constant 0 : i32
    %c0_i32_1 = arith.constant 0 : i32
    return %c0_i32, %c0_i32_0 : i32, i32
  }
  func.func @transform_2(%arg0: i32) -> (i32, i32) {
    %c0_i32 = arith.constant 0 : i32
    %c0_i32_0 = arith.constant 0 : i32
    return %arg0, %c0_i32 : i32, i32
  }
}

module attributes {stable_mosaic.version = 11 : i64} {
  func.func @gcn_last_kernel(%arg0: i32, %arg1: i32, %arg2: memref<128x384xbf16, #tpu.memory_space<vmem>>, %arg3: memref<384x128xbf16, #tpu.memory_space<vmem>>, %arg4: memref<1x128xf32, #tpu.memory_space<vmem>>, %arg5: memref<128x128xbf16, #tpu.memory_space<vmem>>, %arg6: memref<128x128xf32, #tpu.memory_space<vmem>>, %arg7: memref<1x128xf32, #tpu.memory_space<vmem>>, %arg8: memref<128x128xf32, #tpu.memory_space<vmem>>, %arg9: memref<128x128xf32, #tpu.memory_space<vmem>>) attributes {dimension_semantics = [#tpu.dimension_semantics<parallel>, #tpu.dimension_semantics<arbitrary>], iteration_bounds = array<i64: 3, 1>, scalar_prefetch = 0 : i64, scratch_operands = 1 : i64, tpu.core_type = #tpu.core_type<tc>, window_params = [{transform_indices = @transform_0, window_bounds = array<i64: 128, 384>}, {pipeline_mode = #tpu.pipeline_mode<synchronous>, transform_indices = @transform_1, window_bounds = array<i64: 384, 128>}, {pipeline_mode = #tpu.pipeline_mode<synchronous>, transform_indices = @transform_2, window_bounds = array<i64: 1, 128>}, {pipeline_mode = #tpu.pipeline_mode<synchronous>, transform_indices = @transform_3, window_bounds = array<i64: 128, 128>}, {transform_indices = @transform_4, window_bounds = array<i64: 128, 128>}, {pipeline_mode = #tpu.pipeline_mode<synchronous>, transform_indices = @transform_5, window_bounds = array<i64: 1, 128>}, {transform_indices = @transform_6, window_bounds = array<i64: 128, 128>}]} {
    %c0_i32 = arith.constant 0 : i32
    %0 = arith.cmpi eq, %arg1, %c0_i32 : i32
    %1 = arith.extui %0 : i1 to i32
    %c0_i32_0 = arith.constant 0 : i32
    %2 = arith.cmpi ne, %1, %c0_i32_0 : i32
    scf.if %2 {
      %cst_9 = arith.constant 0.000000e+00 : f32
      %15 = vector.broadcast %cst_9 : f32 to vector<128x128xf32>
      %c0_10 = arith.constant 0 : index
      %c0_11 = arith.constant 0 : index
      %16 = vector.load %arg9[%c0_10, %c0_11] : memref<128x128xf32, #tpu.memory_space<vmem>>, vector<128x128xf32>
      tpu.vector_store %arg9[%c0_10, %c0_11], %15 {strides = array<i32>} : memref<128x128xf32, #tpu.memory_space<vmem>>, vector<128x128xf32>,
    } else {
    }
    %c384_i32 = arith.constant 384 : i32
    %3 = arith.muli %arg1, %c384_i32 : i32
    %4 = tpu.assume_multiple %3, 384 : i32
    %5 = arith.index_cast %4 : i32 to index
    %c0 = arith.constant 0 : index
    %6 = vector.load %arg3[%5, %c0] : memref<384x128xbf16, #tpu.memory_space<vmem>>, vector<384x128xbf16>
    %c0_1 = arith.constant 0 : index
    %c0_2 = arith.constant 0 : index
    %7 = vector.load %arg9[%c0_1, %c0_2] : memref<128x128xf32, #tpu.memory_space<vmem>>, vector<128x128xf32>
    %c0_3 = arith.constant 0 : index
    %c0_4 = arith.constant 0 : index
    %8 = vector.load %arg2[%c0_3, %c0_4] : memref<128x384xbf16, #tpu.memory_space<vmem>>, vector<128x384xbf16>
    %cst = arith.constant dense<0.000000e+00> : vector<128x128xf32>
    %9 = tpu.matmul %8, %6, %cst {dimension_numbers = #tpu.dot_dimension_numbers<[1], [0], [0], [1], [0, 0, 1, 1], [], []>} : vector<128x384xbf16>, vector<384x128xbf16>, vector<128x128xf32> -> vector<128x128xf32>
    %10 = arith.addf %7, %9 : vector<128x128xf32>
    %c0_5 = arith.constant 0 : index
    %c0_6 = arith.constant 0 : index
    %11 = vector.load %arg9[%c0_5, %c0_6] : memref<128x128xf32, #tpu.memory_space<vmem>>, vector<128x128xf32>
    tpu.vector_store %arg9[%c0_5, %c0_6], %10 {strides = array<i32>} : memref<128x128xf32, #tpu.memory_space<vmem>>, vector<128x128xf32>,
    %c0_i32_7 = arith.constant 0 : i32
    %12 = arith.cmpi eq, %arg1, %c0_i32_7 : i32
    %13 = arith.extui %12 : i1 to i32
    %c0_i32_8 = arith.constant 0 : i32
    %14 = arith.cmpi ne, %13, %c0_i32_8 : i32
    scf.if %14 {
      %c0_9 = arith.constant 0 : index
      %c0_10 = arith.constant 0 : index
      %15 = vector.load %arg9[%c0_9, %c0_10] : memref<128x128xf32, #tpu.memory_space<vmem>>, vector<128x128xf32>
      %c0_11 = arith.constant 0 : index
      %c0_12 = arith.constant 0 : index
      %16 = vector.load %arg4[%c0_11, %c0_12] : memref<1x128xf32, #tpu.memory_space<vmem>>, vector<1x128xf32>
      %17 = vector.broadcast %16 : vector<1x128xf32> to vector<128x128xf32>
      %18 = arith.addf %15, %17 : vector<128x128xf32>
      %cst_13 = arith.constant 0.000000e+00 : f32
      %19 = vector.broadcast %cst_13 : f32 to vector<128x128xf32>
      %20 = arith.maximumf %18, %19 : vector<128x128xf32>
      %21 = arith.truncf %20 : vector<128x128xf32> to vector<128x128xbf16>
      %c0_14 = arith.constant 0 : index
      %c0_15 = arith.constant 0 : index
      %22 = vector.load %arg6[%c0_14, %c0_15] : memref<128x128xf32, #tpu.memory_space<vmem>>, vector<128x128xf32>
      %c0_16 = arith.constant 0 : index
      %c0_17 = arith.constant 0 : index
      %23 = vector.load %arg5[%c0_16, %c0_17] : memref<128x128xbf16, #tpu.memory_space<vmem>>, vector<128x128xbf16>
      %cst_18 = arith.constant dense<0.000000e+00> : vector<128x128xf32>
      %24 = tpu.matmul %21, %23, %cst_18 {dimension_numbers = #tpu.dot_dimension_numbers<[1], [0], [0], [1], [0, 0, 1, 1], [], []>} : vector<128x128xbf16>, vector<128x128xbf16>, vector<128x128xf32> -> vector<128x128xf32>
      %25 = arith.addf %22, %24 : vector<128x128xf32>
      %c0_19 = arith.constant 0 : index
      %c0_20 = arith.constant 0 : index
      %26 = vector.load %arg7[%c0_19, %c0_20] : memref<1x128xf32, #tpu.memory_space<vmem>>, vector<1x128xf32>
      %27 = vector.broadcast %26 : vector<1x128xf32> to vector<128x128xf32>
      %28 = arith.addf %25, %27 : vector<128x128xf32>
      %29 = tpu.iota {dimensions = array<i32: 1>} : vector<128x128xi32>
      %c7_i32 = arith.constant 7 : i32
      %30 = vector.broadcast %c7_i32 : i32 to vector<128x128xi32>
      %31 = arith.cmpi slt, %29, %30 : vector<128x128xi32>
      %cst_21 = arith.constant -1.000000e+30 : f32
      %32 = vector.broadcast %cst_21 : f32 to vector<128x128xf32>
      %33 = arith.select %31, %28, %32 : vector<128x128xi1>, vector<128x128xf32>
      %cst_22 = arith.constant dense<0xFF800000> : vector<128xf32>
      %34 = vector.multi_reduction <maximumf>, %33, %cst_22 [1] : vector<128x128xf32> to vector<128xf32>
      %35 = vector.shape_cast %34 : vector<128xf32> to vector<128x1xf32>
      %36 = vector.broadcast %35 : vector<128x1xf32> to vector<128x128xf32>
      %37 = arith.subf %33, %36 : vector<128x128xf32>
      %38 = math.exp %37 : vector<128x128xf32>
      %cst_23 = arith.constant dense<0.000000e+00> : vector<128xf32>
      %39 = vector.multi_reduction <add>, %38, %cst_23 [1] : vector<128x128xf32> to vector<128xf32>
      %40 = vector.shape_cast %39 : vector<128xf32> to vector<128x1xf32>
      %41 = math.log %40 : vector<128x1xf32>
      %42 = vector.broadcast %35 : vector<128x1xf32> to vector<128x128xf32>
      %43 = arith.subf %33, %42 : vector<128x128xf32>
      %44 = vector.broadcast %41 : vector<128x1xf32> to vector<128x128xf32>
      %45 = arith.subf %43, %44 : vector<128x128xf32>
      %c0_24 = arith.constant 0 : index
      %c0_25 = arith.constant 0 : index
      %46 = vector.load %arg8[%c0_24, %c0_25] : memref<128x128xf32, #tpu.memory_space<vmem>>, vector<128x128xf32>
      tpu.vector_store %arg8[%c0_24, %c0_25], %45 {strides = array<i32>} : memref<128x128xf32, #tpu.memory_space<vmem>>, vector<128x128xf32>,
    } else {
    }
    return
  }
  func.func @transform_0(%arg0: i32, %arg1: i32) -> (i32, i32) {
    %c0_i32 = arith.constant 0 : i32
    return %arg0, %arg1 : i32, i32
  }
  func.func @transform_1(%arg0: i32, %arg1: i32) -> (i32, i32) {
    %c0_i32 = arith.constant 0 : i32
    %c0_i32_0 = arith.constant 0 : i32
    %c0_i32_1 = arith.constant 0 : i32
    return %c0_i32, %c0_i32_0 : i32, i32
  }
  func.func @transform_2(%arg0: i32, %arg1: i32) -> (i32, i32) {
    %c0_i32 = arith.constant 0 : i32
    %c0_i32_0 = arith.constant 0 : i32
    %c0_i32_1 = arith.constant 0 : i32
    return %c0_i32, %c0_i32_0 : i32, i32
  }
  func.func @transform_3(%arg0: i32, %arg1: i32) -> (i32, i32) {
    %c0_i32 = arith.constant 0 : i32
    %c0_i32_0 = arith.constant 0 : i32
    %c0_i32_1 = arith.constant 0 : i32
    return %c0_i32, %c0_i32_0 : i32, i32
  }
  func.func @transform_4(%arg0: i32, %arg1: i32) -> (i32, i32) {
    %c0_i32 = arith.constant 0 : i32
    %c0_i32_0 = arith.constant 0 : i32
    return %arg0, %c0_i32 : i32, i32
  }
  func.func @transform_5(%arg0: i32, %arg1: i32) -> (i32, i32) {
    %c0_i32 = arith.constant 0 : i32
    %c0_i32_0 = arith.constant 0 : i32
    %c0_i32_1 = arith.constant 0 : i32
    return %c0_i32, %c0_i32_0 : i32, i32
  }
  func.func @transform_6(%arg0: i32, %arg1: i32) -> (i32, i32) {
    %c0_i32 = arith.constant 0 : i32
    %c0_i32_0 = arith.constant 0 : i32
    return %arg0, %c0_i32 : i32, i32
  }
}

</mosaic_0001>

<bundles_post_ra>
// kernel: jknet_forward.3
= control target key start
LH: loop header
LB: loop body
LE: loop exit
PB: predicated region body
PF: predicated region fallthrough
CT: control target
= control target key end

     0   :  { %s605_s9 = smov 0   ;;  %s653_s0 = inlined_call_operand.vmem [shape: bf16[384,128], index: 0, kind: input, shape index: {}]   ;;  %s654_s1 = inlined_call_operand.vmem [shape: bf16[128,128], index: 1, kind: input, shape index: {}]   ;;  %s655_s2 = inlined_call_operand.vmem [shape: bf16[384,128], index: 2, kind: output, shape index: {}]  }
   0x1 LB: > { %s412_s10 = sadd.s32 4294967295, %s588_s9   ;;  %p416_p0 = scmp.ge.s32.totalorder %s588_s9, 1  ;;  %s588_s9 = sphi %s605_s9, %s12_s9  }
   0x2   : > { %p113_p1 = scmp.lt.s32.totalorder %s588_s9, 4 }
   0x4   : > { %p114_p2 = pnand %p416_p0, %p113_p1 }
   0x5   : > { %s417_s19 = sshll.u32 (!%p114_p2), %s412_s10, 4 }
   0x6   : > { %117 = sbr.rel (%p114_p2) target bundleno = 204 (0xcc), region = 28  ;;  %p136_p3 = scmp.lt.s32.totalorder (!%p114_p2), %s417_s19, 47 }
   0xb   : > { %v502_v0 = vld [vmem:[%s654_s1 + $0x38] sm:$0xff]  ;;  %v501_v1 = vld [vmem:[%s654_s1 + $0x30] sm:$0xff]  ;;  %v500_v2 = vld [vmem:[%s654_s1 + $0x28] sm:$0xff]  ;;  %s657_s19 = smov (!%p136_p3, %s417_s19), 47 }
   0xc   : > { %275 = vmatpush.bf16.msra.mxu0 %v502_v0  ;;  %550 = vmatpush.bf16.msra.mxu1 %v502_v0  ;;  %v499_v3 = vld [vmem:[%s654_s1 + $0x20] sm:$0xff]  ;;  %v498_v4 = vld [vmem:[%s654_s1 + $0x18] sm:$0xff]  ;;  %v497_v5 = vld [vmem:[%s654_s1 + $0x10] sm:$0xff]  ;;  %s418_s26 = sshll.u32 %s657_s19, 2 }
   0xd   : > { %551 = vmatpush.bf16.msra.mxu2 %v502_v0  ;;  %552 = vmatpush.bf16.msra.mxu3 %v502_v0  ;;  %v496_v6 = vld [vmem:[%s654_s1 + $0x8] sm:$0xff]  ;;  %v495_v7 = vld [vmem:[%s654_s1] sm:$0xff]  ;;  %s139_s3 = scalar_lea.vmem %s653_s0, %s418_s26  ;;  %s145_s6 = scalar_lea.vmem %s655_s2, %s418_s26 }
   0xe   : > { %v487_v8 = vld [vmem:[%s139_s3] sm:$0xff]  ;;  %v489_v9 = vld [vmem:[%s139_s3 + $0x10] sm:$0xff]  ;;  %v488_v12 = vld [vmem:[%s139_s3 + $0x8] sm:$0xff] }
   0xf   : > { %v491_v10 = vld [vmem:[%s139_s3 + $0x20] sm:$0xff]  ;;  %v493_v11 = vld [vmem:[%s139_s3 + $0x30] sm:$0xff]  ;;  %v490_v13 = vld [vmem:[%s139_s3 + $0x18] sm:$0xff] }
  0x10   : > { %276 = vmatpush.bf16.msra.mxu0 %v501_v1  ;;  %553 = vmatpush.bf16.msra.mxu1 %v501_v1  ;;  %v492_v14 = vld [vmem:[%s139_s3 + $0x28] sm:$0xff]  ;;  %v494_v15 = vld [vmem:[%s139_s3 + $0x38] sm:$0xff] }
  0x11   : > { %554 = vmatpush.bf16.msra.mxu2 %v501_v1  ;;  %555 = vmatpush.bf16.msra.mxu3 %v501_v1 }
  0x14   : > { %277 = vmatpush.bf16.msra.mxu0 %v500_v2  ;;  %556 = vmatpush.bf16.msra.mxu1 %v500_v2 }
  0x15   : > { %557 = vmatpush.bf16.msra.mxu2 %v500_v2  ;;  %558 = vmatpush.bf16.msra.mxu3 %v500_v2 }
  0x18   : > { %278 = vmatpush.bf16.msra.mxu0 %v499_v3  ;;  %559 = vmatpush.bf16.msra.mxu1 %v499_v3 }
  0x19   : > { %560 = vmatpush.bf16.msra.mxu2 %v499_v3  ;;  %561 = vmatpush.bf16.msra.mxu3 %v499_v3 }
  0x1c   : > { %279 = vmatpush.bf16.msra.mxu0 %v498_v4  ;;  %562 = vmatpush.bf16.msra.mxu1 %v498_v4 }
  0x1d   : > { %563 = vmatpush.bf16.msra.mxu2 %v498_v4  ;;  %564 = vmatpush.bf16.msra.mxu3 %v498_v4 }
  0x20   : > { %280 = vmatpush.bf16.msra.mxu0 %v497_v5  ;;  %565 = vmatpush.bf16.msra.mxu1 %v497_v5 }
  0x21   : > { %566 = vmatpush.bf16.msra.mxu2 %v497_v5  ;;  %567 = vmatpush.bf16.msra.mxu3 %v497_v5 }
  0x24   : > { %281 = vmatpush.bf16.msra.mxu0 %v496_v6  ;;  %568 = vmatpush.bf16.msra.mxu1 %v496_v6 }
  0x25   : > { %569 = vmatpush.bf16.msra.mxu2 %v496_v6  ;;  %570 = vmatpush.bf16.msra.mxu3 %v496_v6 }
  0x28   : > { %282 = vmatpush.bf16.msra.mxu0 %v495_v7  ;;  %571 = vmatpush.bf16.msra.mxu1 %v495_v7 }
  0x29   : > { %572 = vmatpush.bf16.msra.mxu2 %v495_v7  ;;  %573 = vmatpush.bf16.msra.mxu3 %v495_v7 }
  0x2b   : > { %283 = vmatmul.bf16.vlgmr.msra.gmra.mxu0 %v487_v8  ;;  %293 = vmatmul.bf16.vlgmr.msra.gmra.mxu1 %v489_v9 }
  0x2c   : > { %303 = vmatmul.bf16.vlgmr.msra.gmra.mxu2 %v491_v10  ;;  %313 = vmatmul.bf16.vlgmr.msra.gmra.mxu3 %v493_v11 }
  0x3b   : > { %288 = vmatmul.bf16.gmra.mxu0 %v488_v12  ;;  %298 = vmatmul.bf16.gmra.mxu1 %v490_v13 }
  0x3c   : > { %308 = vmatmul.bf16.gmra.mxu2 %v492_v14  ;;  %318 = vmatmul.bf16.gmra.mxu3 %v494_v15 }
  0xa8   : > { %v284_v16 = vpop.f32.mrf.mxu0  ;;  %v294_v17 = vpop.f32.mrf.mxu1 }
  0xaf   : > { %v304_v18 = vpop.f32.mrf.mxu2  ;;  %v314_v19 = vpop.f32.mrf.mxu3 }
  0xb0   : > { %v286_v20 = vpop.f32.mrf.mxu0  ;;  %v296_v21 = vpop.f32.mrf.mxu1 }
  0xb1   : > { %v506_v22 = vpack.c.bf16 %v286_v20, %v284_v16  ;;  %v516_v23 = vpack.c.bf16 %v296_v21, %v294_v17 }
  0xb3   : > { %507 = vst [vmem:[%s145_s6] sm:$0xff] %v506_v22  }
  0xb4   : > { %544 = vst [vmem:[%s145_s6 + $0x10] sm:$0xff] %v516_v23  }
  0xb7   : > { %v306_v24 = vpop.f32.mrf.mxu2  ;;  %v316_v25 = vpop.f32.mrf.mxu3 }
  0xb8   : > { %v526_v26 = vpack.c.bf16 %v306_v24, %v304_v18  ;;  %v536_v27 = vpack.c.bf16 %v316_v25, %v314_v19  ;;  %v289_v28 = vpop.f32.mrf.mxu0  ;;  %v299_v29 = vpop.f32.mrf.mxu1 }
  0xba   : > { %546 = vst [vmem:[%s145_s6 + $0x20] sm:$0xff] %v526_v26  }
  0xbb   : > { %548 = vst [vmem:[%s145_s6 + $0x30] sm:$0xff] %v536_v27  }
  0xbf   : > { %v309_v30 = vpop.f32.mrf.mxu2  ;;  %v319_v31 = vpop.f32.mrf.mxu3 }
  0xc0   : > { %v291_v32 = vpop.f32.mrf.mxu0  ;;  %v301_v33 = vpop.f32.mrf.mxu1 }
  0xc1   : > { %v511_v34 = vpack.c.bf16 %v291_v32, %v289_v28  ;;  %v521_v35 = vpack.c.bf16 %v301_v33, %v299_v29 }
  0xc3   : > { %543 = vst [vmem:[%s145_s6 + $0x8] sm:$0xff] %v511_v34  }
  0xc4   : > { %545 = vst [vmem:[%s145_s6 + $0x18] sm:$0xff] %v521_v35  }
  0xc7   : > { %v311_v36 = vpop.f32.mrf.mxu2  ;;  %v321_v37 = vpop.f32.mrf.mxu3 }
  0xc8   : > { %v531_v38 = vpack.c.bf16 %v311_v36, %v309_v30  ;;  %v541_v39 = vpack.c.bf16 %v321_v37, %v319_v31 }
  0xca   : > { %547 = vst [vmem:[%s145_s6 + $0x28] sm:$0xff] %v531_v38  }
  0xcb   : > { %549 = vst [vmem:[%s145_s6 + $0x38] sm:$0xff] %v541_v39  }
  0xcc PF: > { %s12_s9 = sadd.s32 1, %s588_s9  }
  0xcd   : > { %p9_p4 = scmp.ge.s32.totalorder %s12_s9, 5  }
  0xcf   :  { %11 = sbr.rel (!%p9_p4) target bundleno = 1 (0x1), region = 58 }

// kernel: jknet_forward.4
= control target key start
LH: loop header
LB: loop body
LE: loop exit
PB: predicated region body
PF: predicated region fallthrough
CT: control target
= control target key end

     0   :  { %s1841_s21 = smov 0   ;;  %s1843_s22 = smov 0   ;;  %s2191_s0 = inlined_call_operand.vmem [shape: bf16[384,384], index: 0, kind: input, shape index: {}]   ;;  %s2192_s1 = inlined_call_operand.vmem [shape: bf16[384,128], index: 1, kind: input, shape index: {}]   ;;  %s2193_s2 = inlined_call_operand.vmem [shape: f32[1,128], index: 2, kind: input, shape index: {}]   ;;  %s2194_s3 = inlined_call_operand.vmem [shape: bf16[128,256], index: 3, kind: input, shape index: {}]   ;;  %s2195_s4 = inlined_call_operand.vmem [shape: f32[384,128], index: 4, kind: input, shape index: {}, may-alias: {4,6}]   ;;  %s2196_s5 = inlined_call_operand.vmem [shape: bf16[384,128], index: 5, kind: output, shape index: {0}]   ;;  %s2197_s6 = inlined_call_operand.vmem [shape: f32[384,128], index: 6, kind: output, shape index: {1}, may-alias: {4,6}]  }
   0x1   :  { %s1845_s23 = smov 0  }
   0x2 LB: > { %s29_s24 = sadd.s32 1, %s1800_s22  ;;  %p1354_p0 = scmp.ge.s32.totalorder %s1804_s23, 1  ;;  %s1804_s23 = sphi %s1845_s23, %s17_s23   ;;  %s1800_s22 = sphi %s1843_s22, %s2199_s22   ;;  %s1796_s21 = sphi %s1841_s21, %s2198_s21  }
   0x3   : > { %p31_p1 = scmp.ge.s32.totalorder %s29_s24, 3  ;;  %p247_p2 = scmp.lt.s32.totalorder %s1804_s23, 4 }
   0x5   : > { %s2201_s24 = smov (%p31_p1, %s29_s24), 0  ;;  %p248_p3 = pnand %p1354_p0, %p247_p2 }
   0x6   : > { %s1355_s7 = sshll.u32 (!%p248_p3), %s1796_s21, 4 }
   0x7   : > { %251 = sbr.rel (%p248_p3) target bundleno = 479 (0x1df), region = 40  ;;  %p294_p4 = scmp.lt.s32.totalorder (!%p248_p3), %s1355_s7, 47 }
   0xc   : > { %v1628_v0 = vld [vmem:[%s2192_s1 + $0x38] sm:$0xff]  ;;  %v1627_v1 = vld [vmem:[%s2192_s1 + $0x30] sm:$0xff]  ;;  %v1626_v2 = vld [vmem:[%s2192_s1 + $0x28] sm:$0xff]  ;;  %s2203_s7 = smov (!%p294_p4, %s1355_s7), 47 }
   0xd   : > { %1732 = vmatpush.bf16.msra.mxu1 %v1628_v0  ;;  %1733 = vmatpush.bf16.msra.mxu2 %v1628_v0  ;;  %v1625_v3 = vld [vmem:[%s2192_s1 + $0x20] sm:$0xff]  ;;  %v1624_v4 = vld [vmem:[%s2192_s1 + $0x18] sm:$0xff]  ;;  %v1623_v5 = vld [vmem:[%s2192_s1 + $0x10] sm:$0xff]  ;;  %s1756_s14 = smul.u32 12, %s2203_s7  ;;  %s1358_s27 = sshll.u32 %s2203_s7, 3 }
   0xe   : > { %715 = vmatpush.bf16.msra.mxu0 %v1628_v0  ;;  %1734 = vmatpush.bf16.msra.mxu3 %v1628_v0  ;;  %v1622_v6 = vld [vmem:[%s2192_s1 + $0x8] sm:$0xff]  ;;  %v1621_v7 = vld [vmem:[%s2192_s1] sm:$0xff]  ;;  %v1644_v12 = vld [vmem:[%s2192_s1 + $0xb8] sm:$0xff]  ;;  %s308_s30 = scalar_lea.vmem %s2195_s4, %s1358_s27  ;;  %s1360_s8 = sshll.u32 %s2203_s7, 2 }
   0xf   : > { %s1889_s19 = scalar_lea.vmem %s2191_s0, %s1756_s14  ;;  %v1636_v13 = vld [vmem:[%s2192_s1 + $0x78] sm:$0xff]  ;;  %v1643_v18 = vld [vmem:[%s2192_s1 + $0xb0] sm:$0xff]  ;;  %v1642_v21 = vld [vmem:[%s2192_s1 + $0xa8] sm:$0xff]  ;;  %s2140_s11 = scalar_lea.vmem %s2197_s6, %s1358_s27 }
  0x10   : > { %v1389_v8 = vld [vmem:[%s1889_s19 + $0x30] sm:$0xf]  ;;  %v1652_v9 = vld [vmem:[%s1889_s19 + $0x38] sm:$0xf0]  ;;  %v1413_v10 = vld [vmem:[%s1889_s19 + $0x60] sm:$0xf]  ;;  %s2151_s13 = scalar_lea.vmem %s2196_s5, %s1360_s8 }
  0x11   : > { %1735 = vmatpush.bf16.msra.mxu1 %v1627_v1  ;;  %1736 = vmatpush.bf16.msra.mxu2 %v1627_v1  ;;  %v1658_v11 = vld [vmem:[%s1889_s19 + $0x68] sm:$0xf0]  ;;  %v1390_v14 = vor.u32 %v1652_v9, %v1389_v8  ;;  %v1365_v16 = vld [vmem:[%s1889_s19] sm:$0xf]  ;;  %v1635_v19 = vld [vmem:[%s2192_s1 + $0x70] sm:$0xff] }
  0x12   : > { %716 = vmatpush.bf16.msra.mxu0 %v1627_v1  ;;  %1737 = vmatpush.bf16.msra.mxu3 %v1627_v1  ;;  %v1414_v15 = vor.u32 %v1658_v11, %v1413_v10  ;;  %v1646_v17 = vld [vmem:[%s1889_s19 + $0x8] sm:$0xf0]  ;;  %v1641_v23 = vld [vmem:[%s2192_s1 + $0xa0] sm:$0xff]  ;;  %v1401_v25 = vld [vmem:[%s1889_s19 + $0x48] sm:$0xf] }
  0x13   : > { %v1366_v20 = vor.u32 %v1646_v17, %v1365_v16  ;;  %v1634_v22 = vld [vmem:[%s2192_s1 + $0x68] sm:$0xff]  ;;  %v1633_v24 = vld [vmem:[%s2192_s1 + $0x60] sm:$0xff]  ;;  %v1655_v26 = vld [vmem:[%s1889_s19 + $0x50] sm:$0xf0] }
  0x14   : > { %v1425_v27 = vld [vmem:[%s1889_s19 + $0x78] sm:$0xf]  ;;  %v1661_v28 = vld [vmem:[%s1889_s19 + $0x80] sm:$0xf0]  ;;  %v1402_v31 = vor.u32 %v1655_v26, %v1401_v25  ;;  %v1639_v35 = vld [vmem:[%s2192_s1 + $0x90] sm:$0xff] }
  0x15   : > { %1738 = vmatpush.bf16.msra.mxu1 %v1626_v2  ;;  %1739 = vmatpush.bf16.msra.mxu2 %v1626_v2  ;;  %v1640_v29 = vld [vmem:[%s2192_s1 + $0x98] sm:$0xff]  ;;  %v1426_v32 = vor.u32 %v1661_v28, %v1425_v27  ;;  %v1649_v34 = vld [vmem:[%s1889_s19 + $0x20] sm:$0xf0]  ;;  %v1631_v36 = vld [vmem:[%s2192_s1 + $0x50] sm:$0xff] }
  0x16   : > { %717 = vmatpush.bf16.msra.mxu0 %v1626_v2  ;;  %1740 = vmatpush.bf16.msra.mxu3 %v1626_v2  ;;  %v1632_v30 = vld [vmem:[%s2192_s1 + $0x58] sm:$0xff]  ;;  %v1638_v38 = vld [vmem:[%s2192_s1 + $0x88] sm:$0xff]  ;;  %v1637_v40 = vld [vmem:[%s2192_s1 + $0x80] sm:$0xff] }
  0x17   : > { %v1377_v33 = vld [vmem:[%s1889_s19 + $0x18] sm:$0xf]  ;;  %v1630_v39 = vld [vmem:[%s2192_s1 + $0x48] sm:$0xff]  ;;  %v1629_v41 = vld [vmem:[%s2192_s1 + $0x40] sm:$0xff] }
  0x18   : > { %v1378_v37 = vor.u32 %v1649_v34, %v1377_v33  ;;  %v1645_v42 = vld [vmem:[%s1889_s19 + $0x4] sm:$0xf]  ;;  %v1367_v43 = vld [vmem:[%s1889_s19 + $0xc] sm:$0xf0]  ;;  %v1373_v44 = vld [vmem:[%s1889_s19 + $0x8] sm:$0xf] }
  0x19   : > { %1741 = vmatpush.bf16.msra.mxu1 %v1625_v3  ;;  %1742 = vmatpush.bf16.msra.mxu2 %v1625_v3  ;;  %v1647_v45 = vld [vmem:[%s1889_s19 + $0x10] sm:$0xf0]  ;;  %v1370_v46 = vor.u32 %v1645_v42, %v1367_v43  ;;  %v1648_v48 = vld [vmem:[%s1889_s19 + $0x1c] sm:$0xf]  ;;  %v1379_v49 = vld [vmem:[%s1889_s19 + $0x24] sm:$0xf0] }
  0x1a   : > { %718 = vmatpush.bf16.msra.mxu0 %v1625_v3  ;;  %1743 = vmatpush.bf16.msra.mxu3 %v1625_v3  ;;  %v1374_v47 = vor.u32 %v1647_v45, %v1373_v44  ;;  %v1385_v50 = vld [vmem:[%s1889_s19 + $0x20] sm:$0xf]  ;;  %v1650_v51 = vld [vmem:[%s1889_s19 + $0x28] sm:$0xf0]  ;;  %v1382_v52 = vor.u32 %v1648_v48, %v1379_v49  ;;  %v1651_v54 = vld [vmem:[%s1889_s19 + $0x34] sm:$0xf] }
  0x1b   : > { %v1386_v53 = vor.u32 %v1650_v51, %v1385_v50  ;;  %v1391_v55 = vld [vmem:[%s1889_s19 + $0x3c] sm:$0xf0]  ;;  %v1397_v56 = vld [vmem:[%s1889_s19 + $0x38] sm:$0xf]  ;;  %v1653_v57 = vld [vmem:[%s1889_s19 + $0x40] sm:$0xf0] }
  0x1c   : > { %v1394_v58 = vor.u32 %v1651_v54, %v1391_v55  ;;  %v1398_v59 = vor.u32 %v1653_v57, %v1397_v56  ;;  %v1654_v60 = vld [vmem:[%s1889_s19 + $0x4c] sm:$0xf]  ;;  %v1403_v61 = vld [vmem:[%s1889_s19 + $0x54] sm:$0xf0]  ;;  %v1409_v62 = vld [vmem:[%s1889_s19 + $0x50] sm:$0xf] }
  0x1d   : > { %1744 = vmatpush.bf16.msra.mxu1 %v1624_v4  ;;  %1745 = vmatpush.bf16.msra.mxu2 %v1624_v4  ;;  %v1656_v63 = vld [vmem:[%s1889_s19 + $0x58] sm:$0xf0]  ;;  %v1406_v0 = vor.u32 %v1654_v60, %v1403_v61  ;;  %v1437_v2 = vld [vmem:[%s1889_s19 + $0x90] sm:$0xf]  ;;  %v1659_v8 = vld [vmem:[%s1889_s19 + $0x70] sm:$0xf0] }
  0x1e   : > { %719 = vmatpush.bf16.msra.mxu0 %v1624_v4  ;;  %1746 = vmatpush.bf16.msra.mxu3 %v1624_v4  ;;  %v1410_v1 = vor.u32 %v1656_v63, %v1409_v62  ;;  %v1664_v3 = vld [vmem:[%s1889_s19 + $0x98] sm:$0xf0]  ;;  %v1449_v11 = vld [vmem:[%s1889_s19 + $0xa8] sm:$0xf]  ;;  %v1433_v16 = vld [vmem:[%s1889_s19 + $0x80] sm:$0xf] }
  0x1f   : > { %v1438_v4 = vor.u32 %v1664_v3, %v1437_v2  ;;  %v1662_v17 = vld [vmem:[%s1889_s19 + $0x88] sm:$0xf0]  ;;  %v1605_v26 = vld [vmem:[%s2194_s3 + $0x60] sm:$0xf]  ;;  %v1682_v27 = vld [vmem:[%s2194_s3 + $0x64] sm:$0xf0] }
  0x20   : > { %v1681_v28 = vld [vmem:[%s2194_s3 + $0x64] sm:$0xf]  ;;  %v1439_v33 = vld [vmem:[%s1889_s19 + $0x9c] sm:$0xf0]  ;;  %v1445_v34 = vld [vmem:[%s1889_s19 + $0x98] sm:$0xf] }
  0x21   : > { %1747 = vmatpush.bf16.msra.mxu1 %v1623_v5  ;;  %1748 = vmatpush.bf16.msra.mxu2 %v1623_v5  ;;  %v1589_v45 = vld [vmem:[%s2194_s3 + $0x40] sm:$0xf]  ;;  %v1591_v49 = vld [vmem:[%s2194_s3 + $0x48] sm:$0xf0]  ;;  %v1581_v51 = vld [vmem:[%s2194_s3 + $0x30] sm:$0xf] }
  0x22   : > { %720 = vmatpush.bf16.msra.mxu0 %v1623_v5  ;;  %1749 = vmatpush.bf16.msra.mxu3 %v1623_v5  ;;  %v1657_v5 = vld [vmem:[%s1889_s19 + $0x64] sm:$0xf]  ;;  %v1583_v56 = vld [vmem:[%s2194_s3 + $0x38] sm:$0xf0]  ;;  %v1674_v60 = vld [vmem:[%s2194_s3 + $0x24] sm:$0xf0] }
  0x23   : > { %v1673_v61 = vld [vmem:[%s2194_s3 + $0x24] sm:$0xf]  ;;  %v1575_v63 = vld [vmem:[%s2194_s3 + $0x28] sm:$0xf0]  ;;  %v1451_v2 = vld [vmem:[%s1889_s19 + $0xb4] sm:$0xf0] }
  0x24   : > { %v1457_v3 = vld [vmem:[%s1889_s19 + $0xb0] sm:$0xf] }
  0x25   : > { %1750 = vmatpush.bf16.msra.mxu1 %v1622_v6  ;;  %1751 = vmatpush.bf16.msra.mxu2 %v1622_v6 }
  0x26   : > { %721 = vmatpush.bf16.msra.mxu0 %v1622_v6  ;;  %1752 = vmatpush.bf16.msra.mxu3 %v1622_v6  ;;  %v1415_v6 = vld [vmem:[%s1889_s19 + $0x6c] sm:$0xf0] }
  0x27   : > { %v1418_v9 = vor.u32 %v1657_v5, %v1415_v6  ;;  %v1565_v5 = vld [vmem:[%s2194_s3 + $0x10] sm:$0xf]  ;;  %v1672_v6 = vld [vmem:[%s2194_s3 + $0x14] sm:$0xf0] }
  0x29   : > { %1753 = vmatpush.bf16.msra.mxu1 %v1621_v7  ;;  %1754 = vmatpush.bf16.msra.mxu2 %v1621_v7 }
  0x2a   : > { %722 = vmatpush.bf16.msra.mxu0 %v1621_v7  ;;  %1755 = vmatpush.bf16.msra.mxu3 %v1621_v7  ;;  %v1421_v7 = vld [vmem:[%s1889_s19 + $0x68] sm:$0xf] }
  0x2b   : > { %v1422_v10 = vor.u32 %v1659_v8, %v1421_v7  ;;  %v1671_v7 = vld [vmem:[%s2194_s3 + $0x14] sm:$0xf] }
  0x2c   : > { %733 = vmatmul.bf16.vlgmr.msra.gmra.mxu1 %v1390_v14  ;;  %743 = vmatmul.bf16.vlgmr.msra.gmra.mxu2 %v1414_v15  ;;  %v1660_v14 = vld [vmem:[%s1889_s19 + $0x7c] sm:$0xf]  ;;  %v1427_v15 = vld [vmem:[%s1889_s19 + $0x84] sm:$0xf0] }
  0x2d   : > { %813 = vmatpush.bf16.msrb.mxu2 %v1644_v12  ;;  %764 = vmatpush.bf16.msrb.mxu1 %v1636_v13  ;;  %v1667_v12 = vld [vmem:[%s1889_s19 + $0xb0] sm:$0xf0] }
  0x2e   : > { %723 = vmatmul.bf16.vlgmr.msra.gmra.mxu0 %v1366_v20  ;;  %753 = vmatmul.bf16.vlgmr.msra.gmra.mxu3 %v1438_v4  ;;  %v1450_v13 = vor.u32 %v1667_v12, %v1449_v11  ;;  %v1613_v20 = vld [vmem:[%s2194_s3 + $0x70] sm:$0xf]  ;;  %v1668_v4 = vld [vmem:[%s1889_s19 + $0xb8] sm:$0xf0] }
  0x2f   : > { %v1458_v12 = vor.u32 %v1668_v4, %v1457_v3 }
  0x31   : > { %814 = vmatpush.bf16.msrb.mxu2 %v1643_v18  ;;  %765 = vmatpush.bf16.msrb.mxu1 %v1635_v19  ;;  %v1430_v18 = vor.u32 %v1660_v14, %v1427_v15  ;;  %v1434_v19 = vor.u32 %v1662_v17, %v1433_v16  ;;  %v1557_v15 = vld [vmem:[%s2194_s3] sm:$0xf]  ;;  %v1670_v16 = vld [vmem:[%s2194_s3 + $0x4] sm:$0xf0]  ;;  %v1669_v17 = vld [vmem:[%s2194_s3 + $0x4] sm:$0xf] }
  0x35   : > { %815 = vmatpush.bf16.msrb.mxu2 %v1642_v21  ;;  %766 = vmatpush.bf16.msrb.mxu1 %v1634_v22  ;;  %v1684_v21 = vld [vmem:[%s2194_s3 + $0x74] sm:$0xf0]  ;;  %v1683_v22 = vld [vmem:[%s2194_s3 + $0x74] sm:$0xf] }
  0x39   : > { %816 = vmatpush.bf16.msrb.mxu2 %v1641_v23  ;;  %767 = vmatpush.bf16.msrb.mxu1 %v1633_v24  ;;  %v1614_v23 = vor.u32 %v1684_v21, %v1613_v20  ;;  %v1615_v24 = vld [vmem:[%s2194_s3 + $0x78] sm:$0xf0] }
  0x3a   : > { %v1618_v25 = vor.u32 %v1683_v22, %v1615_v24 }
  0x3b   : > { %1053 = vmatpush.bf16.msrb.mxu3 %v1614_v23 }
  0x3c   : > { %738 = vmatmul.bf16.gmra.mxu1 %v1402_v31  ;;  %748 = vmatmul.bf16.gmra.mxu2 %v1426_v32  ;;  %v1663_v32 = vld [vmem:[%s1889_s19 + $0x94] sm:$0xf] }
  0x3d   : > { %817 = vmatpush.bf16.msrb.mxu2 %v1640_v29  ;;  %768 = vmatpush.bf16.msrb.mxu1 %v1632_v30  ;;  %v1606_v29 = vor.u32 %v1682_v27, %v1605_v26  ;;  %v1607_v30 = vld [vmem:[%s2194_s3 + $0x68] sm:$0xf0] }
  0x3e   : > { %728 = vmatmul.bf16.gmra.mxu0 %v1378_v37  ;;  %758 = vmatmul.bf16.gmra.mxu3 %v1450_v13  ;;  %v1610_v31 = vor.u32 %v1681_v28, %v1607_v30  ;;  %v1680_v37 = vld [vmem:[%s2194_s3 + $0x54] sm:$0xf0] }
  0x3f   : > { %1102 = vmatpush.bf16.msrb.mxu0 %v1618_v25  ;;  %1054 = vmatpush.bf16.msrb.mxu3 %v1606_v29 }
  0x41   : > { %818 = vmatpush.bf16.msrb.mxu2 %v1639_v35  ;;  %769 = vmatpush.bf16.msrb.mxu1 %v1631_v36  ;;  %v1665_v35 = vld [vmem:[%s1889_s19 + $0xa0] sm:$0xf0]  ;;  %v1597_v36 = vld [vmem:[%s2194_s3 + $0x50] sm:$0xf] }
  0x42   : > { %v1446_v42 = vor.u32 %v1665_v35, %v1445_v34 }
  0x43   : > { %1103 = vmatpush.bf16.msrb.mxu0 %v1610_v31  ;;  %v2103_v31 = vld [vmem:[%s2193_s2] ss:$0 sm:$0xff] }
  0x45   : > { %819 = vmatpush.bf16.msrb.mxu2 %v1638_v38  ;;  %770 = vmatpush.bf16.msrb.mxu1 %v1630_v39  ;;  %v1679_v38 = vld [vmem:[%s2194_s3 + $0x54] sm:$0xf]  ;;  %v1598_v39 = vor.u32 %v1680_v37, %v1597_v36 }
  0x47   : > { %1055 = vmatpush.bf16.msrb.mxu3 %v1598_v39 }
  0x49   : > { %820 = vmatpush.bf16.msrb.mxu2 %v1637_v40  ;;  %771 = vmatpush.bf16.msrb.mxu1 %v1629_v41  ;;  %v1599_v40 = vld [vmem:[%s2194_s3 + $0x58] sm:$0xf0]  ;;  %v1442_v41 = vor.u32 %v1663_v32, %v1439_v33 }
  0x4a   : > { %v1602_v43 = vor.u32 %v1679_v38, %v1599_v40 }
  0x4c   : > { %772 = vmatmul.bf16.vlgmr.msrb.gmra.mxu1 %v1370_v46  ;;  %821 = vmatmul.bf16.vlgmr.msrb.gmra.mxu2 %v1374_v47  ;;  %v1678_v46 = vld [vmem:[%s2194_s3 + $0x44] sm:$0xf0]  ;;  %v1677_v47 = vld [vmem:[%s2194_s3 + $0x44] sm:$0xf] }
  0x4d   : > { %1104 = vmatpush.bf16.msrb.mxu0 %v1602_v43  ;;  %v1590_v48 = vor.u32 %v1678_v46, %v1589_v45  ;;  %v1594_v50 = vor.u32 %v1677_v47, %v1591_v49 }
  0x4f   : > { %1056 = vmatpush.bf16.msrb.mxu3 %v1590_v48 }
  0x51   : > { %1105 = vmatpush.bf16.msrb.mxu0 %v1594_v50 }
  0x5c   : > { %777 = vmatmul.bf16.gmra.mxu1 %v1382_v52  ;;  %826 = vmatmul.bf16.gmra.mxu2 %v1386_v53  ;;  %v1676_v52 = vld [vmem:[%s2194_s3 + $0x34] sm:$0xf0]  ;;  %v1675_v53 = vld [vmem:[%s2194_s3 + $0x34] sm:$0xf] }
  0x5d   : > { %v1582_v55 = vor.u32 %v1676_v52, %v1581_v51  ;;  %v1586_v57 = vor.u32 %v1675_v53, %v1583_v56 }
  0x5f   : > { %1057 = vmatpush.bf16.msrb.mxu3 %v1582_v55  ;;  %1106 = vmatpush.bf16.msrb.mxu0 %v1586_v57 }
  0x6c   : > { %782 = vmatmul.bf16.gmra.mxu1 %v1394_v58  ;;  %831 = vmatmul.bf16.gmra.mxu2 %v1398_v59  ;;  %v1573_v59 = vld [vmem:[%s2194_s3 + $0x20] sm:$0xf] }
  0x6d   : > { %v1574_v62 = vor.u32 %v1674_v60, %v1573_v59 }
  0x6f   : > { %1058 = vmatpush.bf16.msrb.mxu3 %v1574_v62 }
  0x7c   : > { %787 = vmatmul.bf16.gmra.mxu1 %v1406_v0  ;;  %836 = vmatmul.bf16.gmra.mxu2 %v1410_v1  ;;  %v1666_v0 = vld [vmem:[%s1889_s19 + $0xac] sm:$0xf]  ;;  %v1578_v1 = vor.u32 %v1673_v61, %v1575_v63 }
  0x7d   : > { %v1454_v11 = vor.u32 %v1666_v0, %v1451_v2 }
  0x7e   : > { %1107 = vmatpush.bf16.msrb.mxu0 %v1578_v1 }
  0x8c   : > { %792 = vmatmul.bf16.gmra.mxu1 %v1418_v9  ;;  %841 = vmatmul.bf16.gmra.mxu2 %v1422_v10  ;;  %v1566_v9 = vor.u32 %v1672_v6, %v1565_v5  ;;  %v1567_v10 = vld [vmem:[%s2194_s3 + $0x18] sm:$0xf0] }
  0x8d   : > { %v1570_v13 = vor.u32 %v1671_v7, %v1567_v10 }
  0x8e   : > { %1059 = vmatpush.bf16.msrb.mxu3 %v1566_v9 }
  0x8f   : > { %1108 = vmatpush.bf16.msrb.mxu0 %v1570_v13 }
  0x9c   : > { %797 = vmatmul.bf16.gmra.mxu1 %v1430_v18  ;;  %846 = vmatmul.bf16.gmra.mxu2 %v1434_v19  ;;  %v1558_v18 = vor.u32 %v1670_v16, %v1557_v15  ;;  %v1559_v19 = vld [vmem:[%s2194_s3 + $0x8] sm:$0xf0] }
  0x9d   : > { %v1562_v20 = vor.u32 %v1669_v17, %v1559_v19 }
  0x9e   : > { %1060 = vmatpush.bf16.msrb.mxu3 %v1558_v18 }
  0x9f   : > { %1109 = vmatpush.bf16.msrb.mxu0 %v1562_v20 }
  0xa9   : > { %v2022_v44 = vpop.f32.mrf.mxu1 }
  0xab   : > { %v724_v23 = vpop.f32.mrf.mxu0 }
  0xac   : > { %802 = vmatmul.bf16.gmra.mxu1 %v1442_v41  ;;  %851 = vmatmul.bf16.gmra.mxu2 %v1446_v42 }
  0xaf   : > { %v2045_v54 = vpop.f32.mrf.mxu2 }
  0xb1   : > { %v2050_v58 = vpop.f32.mrf.mxu1 }
  0xb3   : > { %v726_v28 = vpop.f32.mrf.mxu0 }
  0xb7   : > { %v2077_v8 = vpop.f32.mrf.mxu2 }
  0xb9   : > { %v2082_v14 = vpop.f32.mrf.mxu1 }
  0xbb   : > { %v729_v38 = vpop.f32.mrf.mxu0 }
  0xbc   : > { %807 = vmatmul.bf16.gmra.mxu1 %v1454_v11  ;;  %856 = vmatmul.bf16.gmra.mxu2 %v1458_v12 }
  0xbf   : > { %v2096_v21 = vpop.f32.mrf.mxu2 }
  0xc1   : > { %v741_v22 = vpop.f32.mrf.mxu1 }
  0xc3   : > { %v731_v47 = vpop.f32.mrf.mxu0 }
  0xc7   : > { %v2098_v24 = vpop.f32.mrf.mxu2 }
  0xc9   : > { %v773_v25 = vpop.f32.mrf.mxu1 }
  0xca   : > { %v774_v27 = vadd.f32 %v773_v25, %v724_v23 }
  0xcf   : > { %v822_v26 = vpop.f32.mrf.mxu2 }
  0xd0   : > { %v823_v30 = vadd.f32 %v822_v26, %v774_v27 }
  0xd1   : > { %v775_v29 = vpop.f32.mrf.mxu1 }
  0xd2   : > { %v776_v32 = vadd.f32 %v775_v29, %v726_v28  ;;  %v917_v34 = vadd.f32 %v2103_v31, %v823_v30 }
  0xd4   : > { %v933_v39 = vmax.f32 %v917_v34, 0.0 }
  0xd7   : > { %v824_v33 = vpop.f32.mrf.mxu2 }
  0xd8   : > { %v825_v35 = vadd.f32 %v824_v33, %v776_v32 }
  0xd9   : > { %v778_v36 = vpop.f32.mrf.mxu1 }
  0xda   : > { %v918_v37 = vadd.f32 %v2103_v31, %v825_v35  ;;  %v779_v43 = vadd.f32 %v778_v36, %v729_v38 }
  0xdc   : > { %v934_v40 = vmax.f32 %v918_v37, 0.0 }
  0xde   : > { %v949_v41 = vpack.c.bf16 %v934_v40, %v933_v39 }
  0xdf   : > { %v827_v42 = vpop.f32.mrf.mxu2 }
  0xe0   : > { %1061 = vmatmul.bf16.vlgmr.msrb.gmra.mxu3 %v949_v41  ;;  %1110 = vmatmul.bf16.vlgmr.msrb.gmra.mxu0 %v949_v41  ;;  %v828_v46 = vadd.f32 %v827_v42, %v779_v43 }
  0xe1   : > { %v780_v45 = vpop.f32.mrf.mxu1 }
  0xe2   : > { %v781_v48 = vadd.f32 %v780_v45, %v731_v47  ;;  %v919_v50 = vadd.f32 %v2103_v31, %v828_v46 }
  0xe4   : > { %v935_v55 = vmax.f32 %v919_v50, 0.0 }
  0xe7   : > { %v829_v49 = vpop.f32.mrf.mxu2 }
  0xe8   : > { %v830_v51 = vadd.f32 %v829_v49, %v781_v48 }
  0xe9   : > { %v783_v52 = vpop.f32.mrf.mxu1 }
  0xea   : > { %v920_v53 = vadd.f32 %v2103_v31, %v830_v51  ;;  %v784_v61 = vadd.f32 %v783_v52, %v2022_v44 }
  0xec   : > { %v936_v56 = vmax.f32 %v920_v53, 0.0 }
  0xee   : > { %v950_v57 = vpack.c.bf16 %v936_v56, %v935_v55 }
  0xef   : > { %v832_v59 = vpop.f32.mrf.mxu2 }
  0xf0   : > { %1066 = vmatmul.bf16.gmra.mxu3 %v950_v57  ;;  %1115 = vmatmul.bf16.gmra.mxu0 %v950_v57  ;;  %v833_v62 = vadd.f32 %v832_v59, %v784_v61 }
  0xf1   : > { %v785_v60 = vpop.f32.mrf.mxu1 }
  0xf2   : > { %v786_v63 = vadd.f32 %v785_v60, %v2050_v58  ;;  %v921_v1 = vadd.f32 %v2103_v31, %v833_v62 }
  0xf4   : > { %v937_v5 = vmax.f32 %v921_v1, 0.0 }
  0xf7   : > { %v834_v0 = vpop.f32.mrf.mxu2 }
  0xf8   : > { %v835_v2 = vadd.f32 %v834_v0, %v786_v63 }
  0xf9   : > { %v788_v3 = vpop.f32.mrf.mxu1 }
  0xfa   : > { %v922_v4 = vadd.f32 %v2103_v31, %v835_v2  ;;  %v789_v11 = vadd.f32 %v788_v3, %v2082_v14 }
  0xfc   : > { %v938_v6 = vmax.f32 %v922_v4, 0.0 }
  0xfe   : > { %v951_v7 = vpack.c.bf16 %v938_v6, %v937_v5 }
  0xff   : > { %v837_v9 = vpop.f32.mrf.mxu2 }
 0x100   : > { %1071 = vmatmul.bf16.gmra.mxu3 %v951_v7  ;;  %1120 = vmatmul.bf16.gmra.mxu0 %v951_v7  ;;  %v838_v44 = vadd.f32 %v837_v9, %v789_v11 }
 0x101   : > { %v790_v10 = vpop.f32.mrf.mxu1 }
 0x102   : > { %v791_v12 = vadd.f32 %v790_v10, %v741_v22  ;;  %v923_v58 = vadd.f32 %v2103_v31, %v838_v44 }
 0x104   : > { %v939_v18 = vmax.f32 %v923_v58, 0.0  ;;  %v1151_v58 = vld [vmem:[%s308_s30] sm:$0xff] }
 0x107   : > { %v839_v13 = vpop.f32.mrf.mxu2 }
 0x108   : > { %v840_v15 = vadd.f32 %v839_v13, %v791_v12 }
 0x109   : > { %v793_v16 = vpop.f32.mrf.mxu1 }
 0x10a   : > { %v924_v17 = vadd.f32 %v2103_v31, %v840_v15  ;;  %v794_v26 = vadd.f32 %v793_v16, %v2045_v54  ;;  %v1152_v15 = vld [vmem:[%s308_s30 + $0x8] sm:$0xff]  ;;  %v1153_v16 = vld [vmem:[%s308_s30 + $0x10] sm:$0xff] }
 0x10c   : > { %v940_v19 = vmax.f32 %v924_v17, 0.0  ;;  %v1154_v17 = vld [vmem:[%s308_s30 + $0x18] sm:$0xff] }
 0x10e   : > { %v952_v20 = vpack.c.bf16 %v940_v19, %v939_v18  ;;  %v1155_v18 = vld [vmem:[%s308_s30 + $0x20] sm:$0xff]  ;;  %v1156_v19 = vld [vmem:[%s308_s30 + $0x28] sm:$0xff] }
 0x10f   : > { %v842_v23 = vpop.f32.mrf.mxu2 }
 0x110   : > { %1076 = vmatmul.bf16.gmra.mxu3 %v952_v20  ;;  %1125 = vmatmul.bf16.gmra.mxu0 %v952_v20  ;;  %v843_v27 = vadd.f32 %v842_v23, %v794_v26  ;;  %v1157_v20 = vld [vmem:[%s308_s30 + $0x30] sm:$0xff]  ;;  %v1159_v23 = vld [vmem:[%s308_s30 + $0x40] sm:$0xff] }
 0x111   : > { %v795_v25 = vpop.f32.mrf.mxu1  ;;  %v1161_v26 = vld [vmem:[%s308_s30 + $0x50] sm:$0xff] }
 0x112   : > { %v796_v14 = vadd.f32 %v795_v25, %v2077_v8  ;;  %v925_v28 = vadd.f32 %v2103_v31, %v843_v27  ;;  %v754_v8 = vpop.f32.mrf.mxu3  ;;  %v1160_v25 = vld [vmem:[%s308_s30 + $0x48] sm:$0xff]  ;;  %v2133_v27 = vld [vmem:[%s308_s30 + $0x58] sm:$0xff] }
 0x114   : > { %v941_v33 = vmax.f32 %v925_v28, 0.0  ;;  %v2142_v28 = vld [vmem:[%s308_s30 + $0x68] sm:$0xff] }
 0x117   : > { %v844_v22 = vpop.f32.mrf.mxu2 }
 0x118   : > { %v845_v29 = vadd.f32 %v844_v22, %v796_v14  ;;  %v2135_v14 = vld [vmem:[%s308_s30 + $0x60] sm:$0xff] }
 0x119   : > { %v798_v30 = vpop.f32.mrf.mxu1 }
 0x11a   : > { %v926_v32 = vadd.f32 %v2103_v31, %v845_v29  ;;  %v799_v38 = vadd.f32 %v798_v30, %v2096_v21  ;;  %v756_v51 = vpop.f32.mrf.mxu3  ;;  %v2144_v29 = vld [vmem:[%s308_s30 + $0x70] sm:$0xff]  ;;  %v2146_v30 = vld [vmem:[%s308_s30 + $0x78] sm:$0xff] }
 0x11c   : > { %v942_v34 = vmax.f32 %v926_v32, 0.0 }
 0x11e   : > { %v953_v35 = vpack.c.bf16 %v942_v34, %v941_v33 }
 0x11f   : > { %v847_v36 = vpop.f32.mrf.mxu2 }
 0x120   : > { %1081 = vmatmul.bf16.gmra.mxu3 %v953_v35  ;;  %1130 = vmatmul.bf16.gmra.mxu0 %v953_v35  ;;  %v848_v54 = vadd.f32 %v847_v36, %v799_v38 }
 0x121   : > { %v800_v37 = vpop.f32.mrf.mxu1 }
 0x122   : > { %v801_v39 = vadd.f32 %v800_v37, %v2098_v24  ;;  %v927_v41 = vadd.f32 %v2103_v31, %v848_v54  ;;  %v759_v60 = vpop.f32.mrf.mxu3 }
 0x124   : > { %v943_v46 = vmax.f32 %v927_v41, 0.0 }
 0x127   : > { %v849_v40 = vpop.f32.mrf.mxu2 }
 0x128   : > { %v850_v42 = vadd.f32 %v849_v40, %v801_v39 }
 0x129   : > { %v803_v43 = vpop.f32.mrf.mxu1 }
 0x12a   : > { %v928_v45 = vadd.f32 %v2103_v31, %v850_v42  ;;  %v804_v50 = vadd.f32 %v803_v43, %v754_v8  ;;  %v761_v4 = vpop.f32.mrf.mxu3 }
 0x12c   : > { %v944_v47 = vmax.f32 %v928_v45, 0.0 }
 0x12e   : > { %v954_v48 = vpack.c.bf16 %v944_v47, %v943_v46 }
 0x12f   : > { %v852_v49 = vpop.f32.mrf.mxu2 }
 0x130   : > { %1086 = vmatmul.bf16.gmra.mxu3 %v954_v48  ;;  %1135 = vmatmul.bf16.gmra.mxu0 %v954_v48  ;;  %v853_v52 = vadd.f32 %v852_v49, %v804_v50 }
 0x131   : > { %v805_v21 = vpop.f32.mrf.mxu1 }
 0x132   : > { %v806_v53 = vadd.f32 %v805_v21, %v756_v51  ;;  %v929_v55 = vadd.f32 %v2103_v31, %v853_v52 }
 0x134   : > { %v945_v61 = vmax.f32 %v929_v55, 0.0 }
 0x137   : > { %v854_v24 = vpop.f32.mrf.mxu2 }
 0x138   : > { %v855_v56 = vadd.f32 %v854_v24, %v806_v53 }
 0x139   : > { %v808_v57 = vpop.f32.mrf.mxu1 }
 0x13a   : > { %v930_v59 = vadd.f32 %v2103_v31, %v855_v56  ;;  %v809_v1 = vadd.f32 %v808_v57, %v759_v60 }
 0x13c   : > { %v946_v62 = vmax.f32 %v930_v59, 0.0 }
 0x13e   : > { %v955_v63 = vpack.c.bf16 %v946_v62, %v945_v61 }
 0x13f   : > { %v857_v0 = vpop.f32.mrf.mxu2 }
 0x140   : > { %1091 = vmatmul.bf16.gmra.mxu3 %v955_v63  ;;  %1140 = vmatmul.bf16.gmra.mxu0 %v955_v63  ;;  %v858_v3 = vadd.f32 %v857_v0, %v809_v1 }
 0x141   : > { %v810_v2 = vpop.f32.mrf.mxu1 }
 0x142   : > { %v811_v5 = vadd.f32 %v810_v2, %v761_v4  ;;  %v931_v7 = vadd.f32 %v2103_v31, %v858_v3 }
 0x144   : > { %v947_v11 = vmax.f32 %v931_v7, 0.0 }
 0x147   : > { %v859_v6 = vpop.f32.mrf.mxu2 }
 0x148   : > { %v860_v9 = vadd.f32 %v859_v6, %v811_v5 }
 0x14a   : > { %v932_v10 = vadd.f32 %v2103_v31, %v860_v9  ;;  %v1158_v31 = vld [vmem:[%s308_s30 + $0x38] sm:$0xff] }
 0x14c   : > { %v948_v44 = vmax.f32 %v932_v10, 0.0 }
 0x14e   : > { %v956_v12 = vpack.c.bf16 %v948_v44, %v947_v11 }
 0x150   : > { %1096 = vmatmul.bf16.gmra.mxu3 %v956_v12  ;;  %1145 = vmatmul.bf16.gmra.mxu0 %v956_v12 }
 0x15d   : > { %v1111_v13 = vpop.f32.mrf.mxu0 }
 0x163   : > { %v1062_v22 = vpop.f32.mrf.mxu3 }
 0x164   : > { %v1167_v32 = vadd.f32 %v1151_v58, %v1062_v22 }
 0x165   : > { %v1113_v33 = vpop.f32.mrf.mxu0 }
 0x166   : > { %v1688_v34 = vpack.c.bf16 %v1113_v33, %v1111_v13  ;;  %1183 = vst [vmem:[%s2140_s11] sm:$0xff] %v1167_v32 }
 0x168   : > { %1689 = vst [vmem:[%s2151_s13] sm:$0xff] %v1688_v34  }
 0x16b   : > { %v1064_v35 = vpop.f32.mrf.mxu3 }
 0x16c   : > { %v1168_v36 = vadd.f32 %v1152_v15, %v1064_v35 }
 0x16d   : > { %v1116_v37 = vpop.f32.mrf.mxu0 }
 0x16e   : > { %1184 = vst [vmem:[%s2140_s11 + $0x8] sm:$0xff] %v1168_v36 }
 0x173   : > { %v1067_v38 = vpop.f32.mrf.mxu3 }
 0x174   : > { %v1169_v54 = vadd.f32 %v1153_v16, %v1067_v38 }
 0x175   : > { %v1118_v39 = vpop.f32.mrf.mxu0 }
 0x176   : > { %v1693_v8 = vpack.c.bf16 %v1118_v39, %v1116_v37  ;;  %1185 = vst [vmem:[%s2140_s11 + $0x10] sm:$0xff] %v1169_v54 }
 0x178   : > { %1725 = vst [vmem:[%s2151_s13 + $0x8] sm:$0xff] %v1693_v8  }
 0x17b   : > { %v1069_v40 = vpop.f32.mrf.mxu3 }
 0x17c   : > { %v1170_v41 = vadd.f32 %v1154_v17, %v1069_v40 }
 0x17d   : > { %v1121_v42 = vpop.f32.mrf.mxu0 }
 0x17e   : > { %1186 = vst [vmem:[%s2140_s11 + $0x18] sm:$0xff] %v1170_v41 }
 0x183   : > { %v1072_v43 = vpop.f32.mrf.mxu3 }
 0x184   : > { %v1171_v45 = vadd.f32 %v1155_v18, %v1072_v43 }
 0x185   : > { %v1123_v46 = vpop.f32.mrf.mxu0 }
 0x186   : > { %v1698_v47 = vpack.c.bf16 %v1123_v46, %v1121_v42  ;;  %1187 = vst [vmem:[%s2140_s11 + $0x20] sm:$0xff] %v1171_v45 }
 0x188   : > { %1726 = vst [vmem:[%s2151_s13 + $0x10] sm:$0xff] %v1698_v47  }
 0x18b   : > { %v1074_v48 = vpop.f32.mrf.mxu3 }
 0x18c   : > { %v1172_v49 = vadd.f32 %v1156_v19, %v1074_v48 }
 0x18d   : > { %v1126_v50 = vpop.f32.mrf.mxu0 }
 0x18e   : > { %1188 = vst [vmem:[%s2140_s11 + $0x28] sm:$0xff] %v1172_v49 }
 0x193   : > { %v1077_v51 = vpop.f32.mrf.mxu3 }
 0x194   : > { %v1173_v21 = vadd.f32 %v1157_v20, %v1077_v51 }
 0x195   : > { %v1128_v52 = vpop.f32.mrf.mxu0 }
 0x196   : > { %v1703_v53 = vpack.c.bf16 %v1128_v52, %v1126_v50  ;;  %1189 = vst [vmem:[%s2140_s11 + $0x30] sm:$0xff] %v1173_v21 }
 0x198   : > { %1727 = vst [vmem:[%s2151_s13 + $0x18] sm:$0xff] %v1703_v53  }
 0x19b   : > { %v1079_v24 = vpop.f32.mrf.mxu3 }
 0x19c   : > { %v1174_v55 = vadd.f32 %v1158_v31, %v1079_v24 }
 0x19d   : > { %v1131_v56 = vpop.f32.mrf.mxu0 }
 0x19e   : > { %1190 = vst [vmem:[%s2140_s11 + $0x38] sm:$0xff] %v1174_v55 }
 0x1a3   : > { %v1082_v57 = vpop.f32.mrf.mxu3 }
 0x1a4   : > { %v1175_v59 = vadd.f32 %v1159_v23, %v1082_v57 }
 0x1a5   : > { %v1133_v60 = vpop.f32.mrf.mxu0 }
 0x1a6   : > { %v1708_v61 = vpack.c.bf16 %v1133_v60, %v1131_v56  ;;  %1191 = vst [vmem:[%s2140_s11 + $0x40] sm:$0xff] %v1175_v59 }
 0x1a8   : > { %1728 = vst [vmem:[%s2151_s13 + $0x20] sm:$0xff] %v1708_v61  }
 0x1ab   : > { %v1084_v62 = vpop.f32.mrf.mxu3 }
 0x1ac   : > { %v1176_v63 = vadd.f32 %v1160_v25, %v1084_v62 }
 0x1ad   : > { %v1136_v0 = vpop.f32.mrf.mxu0 }
 0x1ae   : > { %1192 = vst [vmem:[%s2140_s11 + $0x48] sm:$0xff] %v1176_v63 }
 0x1b3   : > { %v1087_v1 = vpop.f32.mrf.mxu3 }
 0x1b4   : > { %v1177_v2 = vadd.f32 %v1161_v26, %v1087_v1 }
 0x1b5   : > { %v1138_v3 = vpop.f32.mrf.mxu0 }
 0x1b6   : > { %v1713_v4 = vpack.c.bf16 %v1138_v3, %v1136_v0  ;;  %1193 = vst [vmem:[%s2140_s11 + $0x50] sm:$0xff] %v1177_v2 }
 0x1b8   : > { %1729 = vst [vmem:[%s2151_s13 + $0x28] sm:$0xff] %v1713_v4  }
 0x1bb   : > { %v1089_v5 = vpop.f32.mrf.mxu3 }
 0x1bc   : > { %v1178_v6 = vadd.f32 %v2133_v27, %v1089_v5 }
 0x1bd   : > { %v1141_v7 = vpop.f32.mrf.mxu0 }
 0x1be   : > { %1194 = vst [vmem:[%s2140_s11 + $0x58] sm:$0xff] %v1178_v6 }
 0x1c3   : > { %v1092_v9 = vpop.f32.mrf.mxu3 }
 0x1c4   : > { %v1179_v10 = vadd.f32 %v2135_v14, %v1092_v9 }
 0x1c5   : > { %v1143_v11 = vpop.f32.mrf.mxu0 }
 0x1c6   : > { %v1718_v44 = vpack.c.bf16 %v1143_v11, %v1141_v7  ;;  %1195 = vst [vmem:[%s2140_s11 + $0x60] sm:$0xff] %v1179_v10 }
 0x1c8   : > { %1730 = vst [vmem:[%s2151_s13 + $0x30] sm:$0xff] %v1718_v44  }
 0x1cb   : > { %v1094_v12 = vpop.f32.mrf.mxu3 }
 0x1cc   : > { %v1180_v13 = vadd.f32 %v2142_v28, %v1094_v12 }
 0x1cd   : > { %v1146_v58 = vpop.f32.mrf.mxu0 }
 0x1ce   : > { %1196 = vst [vmem:[%s2140_s11 + $0x68] sm:$0xff] %v1180_v13 }
 0x1d3   : > { %v1097_v15 = vpop.f32.mrf.mxu3 }
 0x1d4   : > { %v1181_v16 = vadd.f32 %v2144_v29, %v1097_v15 }
 0x1d5   : > { %v1148_v17 = vpop.f32.mrf.mxu0 }
 0x1d6   : > { %v1723_v18 = vpack.c.bf16 %v1148_v17, %v1146_v58  ;;  %1197 = vst [vmem:[%s2140_s11 + $0x70] sm:$0xff] %v1181_v16 }
 0x1d8   : > { %1731 = vst [vmem:[%s2151_s13 + $0x38] sm:$0xff] %v1723_v18  }
 0x1db   : > { %v1099_v19 = vpop.f32.mrf.mxu3 }
 0x1dc   : > { %v1182_v20 = vadd.f32 %v2146_v30, %v1099_v19 }
 0x1de   : > { %1198 = vst [vmem:[%s2140_s11 + $0x78] sm:$0xff] %v1182_v20 }
 0x1df PF: > { %s17_s23 = sadd.s32 1, %s1804_s23   ;;  %s2198_s21 = smov %s1800_s22 }
 0x1e0   : > { %p14_p5 = scmp.ge.s32.totalorder %s17_s23, 5   ;;  %s2199_s22 = smov %s2201_s24 }
 0x1e2   :  { %16 = sbr.rel (!%p14_p5) target bundleno = 2 (0x2), region = 94 }

// kernel: jknet_forward.5
= control target key start
LH: loop header
LB: loop body
LE: loop exit
PB: predicated region body
PF: predicated region fallthrough
CT: control target
= control target key end

     0   :  { %s1831_s21 = smov 0   ;;  %s1833_s22 = smov 0   ;;  %s2265_s0 = inlined_call_operand.vmem [shape: bf16[384,384], index: 0, kind: input, shape index: {}]   ;;  %s2266_s1 = inlined_call_operand.vmem [shape: bf16[384,128], index: 1, kind: input, shape index: {}]   ;;  %s2267_s2 = inlined_call_operand.vmem [shape: f32[1,128], index: 2, kind: input, shape index: {}]   ;;  %s2268_s3 = inlined_call_operand.vmem [shape: bf16[128,128], index: 3, kind: input, shape index: {}]   ;;  %s2269_s4 = inlined_call_operand.vmem [shape: f32[384,128], index: 4, kind: input, shape index: {}, may-alias: {4,6}]   ;;  %s2270_s5 = inlined_call_operand.vmem [shape: f32[1,128], index: 5, kind: input, shape index: {}]   ;;  %s2271_s6 = inlined_call_operand.vmem [shape: f32[384,128], index: 6, kind: output, shape index: {}, may-alias: {4,6}]  }
   0x1   :  { %s1835_s23 = smov 0  }
   0x2 LB: > { %s28_s24 = sadd.s32 1, %s1790_s22  ;;  %p1392_p0 = scmp.ge.s32.totalorder %s1794_s23, 1  ;;  %s1794_s23 = sphi %s1835_s23, %s16_s23   ;;  %s1790_s22 = sphi %s1833_s22, %s2273_s22   ;;  %s1786_s21 = sphi %s1831_s21, %s2272_s21  }
   0x3   : > { %p30_p1 = scmp.ge.s32.totalorder %s28_s24, 3  ;;  %p244_p2 = scmp.lt.s32.totalorder %s1794_s23, 4 }
   0x5   : > { %s2275_s24 = smov (%p30_p1, %s28_s24), 0  ;;  %p245_p3 = pnand %p1392_p0, %p244_p2 }
   0x6   : > { %s1393_s19 = sshll.u32 (!%p245_p3), %s1786_s21, 4 }
   0x7   : > { %248 = sbr.rel (%p245_p3) target bundleno = 706 (0x2c2), region = 44  ;;  %p286_p4 = scmp.lt.s32.totalorder (!%p245_p3), %s1393_s19, 47 }
   0xc   : > { %v1632_v0 = vld [vmem:[%s2266_s1 + $0x38] sm:$0xff]  ;;  %v1631_v3 = vld [vmem:[%s2266_s1 + $0x30] sm:$0xff]  ;;  %v1630_v6 = vld [vmem:[%s2266_s1 + $0x28] sm:$0xff]  ;;  %s2277_s19 = smov (!%p286_p4, %s1393_s19), 47 }
   0xd   : > { %v1640_v1 = vld [vmem:[%s2266_s1 + $0x78] sm:$0xff]  ;;  %701 = vmatpush.bf16.msra.mxu0 %v1632_v0  ;;  %v1639_v4 = vld [vmem:[%s2266_s1 + $0x70] sm:$0xff]  ;;  %v1638_v7 = vld [vmem:[%s2266_s1 + $0x68] sm:$0xff]  ;;  %s1681_s15 = smul.u32 12, %s2277_s19  ;;  %s1396_s11 = sshll.u32 %s2277_s19, 3 }
   0xe   : > { %v1648_v2 = vld [vmem:[%s2266_s1 + $0xb8] sm:$0xff]  ;;  %750 = vmatpush.bf16.msra.mxu1 %v1640_v1  ;;  %v1647_v5 = vld [vmem:[%s2266_s1 + $0xb0] sm:$0xff]  ;;  %v1646_v8 = vld [vmem:[%s2266_s1 + $0xa8] sm:$0xff]  ;;  %s2031_s14 = scalar_lea.vmem %s2269_s4, %s1396_s11  ;;  %s2222_s20 = scalar_lea.vmem %s2271_s6, %s1396_s11 }
   0xf   : > { %799 = vmatpush.bf16.msra.mxu2 %v1648_v2  ;;  %v1629_v9 = vld [vmem:[%s2266_s1 + $0x20] sm:$0xff]  ;;  %v1628_v12 = vld [vmem:[%s2266_s1 + $0x18] sm:$0xff]  ;;  %v1627_v15 = vld [vmem:[%s2266_s1 + $0x10] sm:$0xff]  ;;  %s1918_s29 = scalar_lea.vmem %s2265_s0, %s1681_s15 }
  0x10   : > { %v1637_v10 = vld [vmem:[%s2266_s1 + $0x60] sm:$0xff]  ;;  %v1636_v13 = vld [vmem:[%s2266_s1 + $0x58] sm:$0xff]  ;;  %v1635_v16 = vld [vmem:[%s2266_s1 + $0x50] sm:$0xff] }
  0x11   : > { %702 = vmatpush.bf16.msra.mxu0 %v1631_v3  ;;  %v1645_v11 = vld [vmem:[%s2266_s1 + $0xa0] sm:$0xff]  ;;  %v1644_v14 = vld [vmem:[%s2266_s1 + $0x98] sm:$0xff]  ;;  %v1643_v17 = vld [vmem:[%s2266_s1 + $0x90] sm:$0xff] }
  0x12   : > { %751 = vmatpush.bf16.msra.mxu1 %v1639_v4  ;;  %v1626_v18 = vld [vmem:[%s2266_s1 + $0x8] sm:$0xff]  ;;  %v1625_v21 = vld [vmem:[%s2266_s1] sm:$0xff]  ;;  %v1403_v26 = vld [vmem:[%s1918_s29 + $0xc] sm:$0xf0] }
  0x13   : > { %800 = vmatpush.bf16.msra.mxu2 %v1647_v5  ;;  %v1634_v19 = vld [vmem:[%s2266_s1 + $0x48] sm:$0xff]  ;;  %v1633_v22 = vld [vmem:[%s2266_s1 + $0x40] sm:$0xff]  ;;  %v1651_v29 = vld [vmem:[%s1918_s29 + $0x10] sm:$0xf0] }
  0x14   : > { %v1642_v20 = vld [vmem:[%s2266_s1 + $0x88] sm:$0xff]  ;;  %v1401_v23 = vld [vmem:[%s1918_s29] sm:$0xf]  ;;  %v1649_v25 = vld [vmem:[%s1918_s29 + $0x4] sm:$0xf] }
  0x15   : > { %703 = vmatpush.bf16.msra.mxu0 %v1630_v6  ;;  %v1650_v24 = vld [vmem:[%s1918_s29 + $0x8] sm:$0xf0]  ;;  %v1641_v27 = vld [vmem:[%s2266_s1 + $0x80] sm:$0xff]  ;;  %v1409_v28 = vld [vmem:[%s1918_s29 + $0x8] sm:$0xf]  ;;  %v1406_v31 = vor.u32 %v1649_v25, %v1403_v26 }
  0x16   : > { %752 = vmatpush.bf16.msra.mxu1 %v1638_v7  ;;  %v1402_v30 = vor.u32 %v1650_v24, %v1401_v23  ;;  %v1410_v32 = vor.u32 %v1651_v29, %v1409_v28  ;;  %v1413_v33 = vld [vmem:[%s1918_s29 + $0x18] sm:$0xf]  ;;  %v1653_v34 = vld [vmem:[%s1918_s29 + $0x20] sm:$0xf0]  ;;  %v1652_v35 = vld [vmem:[%s1918_s29 + $0x1c] sm:$0xf] }
  0x17   : > { %801 = vmatpush.bf16.msra.mxu2 %v1646_v8  ;;  %v1415_v36 = vld [vmem:[%s1918_s29 + $0x24] sm:$0xf0]  ;;  %v1421_v37 = vld [vmem:[%s1918_s29 + $0x20] sm:$0xf]  ;;  %v1654_v38 = vld [vmem:[%s1918_s29 + $0x28] sm:$0xf0]  ;;  %v1414_v39 = vor.u32 %v1653_v34, %v1413_v33 }
  0x18   : > { %v1418_v40 = vor.u32 %v1652_v35, %v1415_v36  ;;  %v1422_v41 = vor.u32 %v1654_v38, %v1421_v37  ;;  %v1425_v42 = vld [vmem:[%s1918_s29 + $0x30] sm:$0xf]  ;;  %v1656_v43 = vld [vmem:[%s1918_s29 + $0x38] sm:$0xf0]  ;;  %v1655_v44 = vld [vmem:[%s1918_s29 + $0x34] sm:$0xf] }
  0x19   : > { %704 = vmatpush.bf16.msra.mxu0 %v1629_v9  ;;  %v1427_v45 = vld [vmem:[%s1918_s29 + $0x3c] sm:$0xf0]  ;;  %v1433_v46 = vld [vmem:[%s1918_s29 + $0x38] sm:$0xf]  ;;  %v1657_v47 = vld [vmem:[%s1918_s29 + $0x40] sm:$0xf0]  ;;  %v1426_v48 = vor.u32 %v1656_v43, %v1425_v42 }
  0x1a   : > { %753 = vmatpush.bf16.msra.mxu1 %v1637_v10  ;;  %v1430_v49 = vor.u32 %v1655_v44, %v1427_v45  ;;  %v1434_v50 = vor.u32 %v1657_v47, %v1433_v46  ;;  %v1437_v51 = vld [vmem:[%s1918_s29 + $0x48] sm:$0xf]  ;;  %v1659_v52 = vld [vmem:[%s1918_s29 + $0x50] sm:$0xf0]  ;;  %v1658_v53 = vld [vmem:[%s1918_s29 + $0x4c] sm:$0xf] }
  0x1b   : > { %802 = vmatpush.bf16.msra.mxu2 %v1645_v11  ;;  %v1439_v54 = vld [vmem:[%s1918_s29 + $0x54] sm:$0xf0]  ;;  %v1445_v55 = vld [vmem:[%s1918_s29 + $0x50] sm:$0xf]  ;;  %v1660_v56 = vld [vmem:[%s1918_s29 + $0x58] sm:$0xf0]  ;;  %v1438_v57 = vor.u32 %v1659_v52, %v1437_v51 }
  0x1c   : > { %v1442_v58 = vor.u32 %v1658_v53, %v1439_v54  ;;  %v1446_v59 = vor.u32 %v1660_v56, %v1445_v55  ;;  %v1449_v60 = vld [vmem:[%s1918_s29 + $0x60] sm:$0xf]  ;;  %v1662_v61 = vld [vmem:[%s1918_s29 + $0x68] sm:$0xf0]  ;;  %v1661_v62 = vld [vmem:[%s1918_s29 + $0x64] sm:$0xf] }
  0x1d   : > { %705 = vmatpush.bf16.msra.mxu0 %v1628_v12  ;;  %v1451_v63 = vld [vmem:[%s1918_s29 + $0x6c] sm:$0xf0]  ;;  %v1457_v0 = vld [vmem:[%s1918_s29 + $0x68] sm:$0xf]  ;;  %v1663_v1 = vld [vmem:[%s1918_s29 + $0x70] sm:$0xf0]  ;;  %v1450_v2 = vor.u32 %v1662_v61, %v1449_v60 }
  0x1e   : > { %754 = vmatpush.bf16.msra.mxu1 %v1636_v13  ;;  %v1454_v3 = vor.u32 %v1661_v62, %v1451_v63  ;;  %v1458_v4 = vor.u32 %v1663_v1, %v1457_v0  ;;  %v1461_v5 = vld [vmem:[%s1918_s29 + $0x78] sm:$0xf]  ;;  %v1665_v6 = vld [vmem:[%s1918_s29 + $0x80] sm:$0xf0]  ;;  %v1664_v7 = vld [vmem:[%s1918_s29 + $0x7c] sm:$0xf] }
  0x1f   : > { %803 = vmatpush.bf16.msra.mxu2 %v1644_v14  ;;  %v1463_v8 = vld [vmem:[%s1918_s29 + $0x84] sm:$0xf0]  ;;  %v1469_v9 = vld [vmem:[%s1918_s29 + $0x80] sm:$0xf]  ;;  %v1666_v10 = vld [vmem:[%s1918_s29 + $0x88] sm:$0xf0]  ;;  %v1462_v11 = vor.u32 %v1665_v6, %v1461_v5 }
  0x20   : > { %v1466_v12 = vor.u32 %v1664_v7, %v1463_v8  ;;  %v1470_v13 = vor.u32 %v1666_v10, %v1469_v9  ;;  %v1680_v14 = vld [vmem:[%s2268_s3 + $0x38] sm:$0xff]  ;;  %v1678_v24 = vld [vmem:[%s2268_s3 + $0x28] sm:$0xff]  ;;  %v1677_v26 = vld [vmem:[%s2268_s3 + $0x20] sm:$0xff] }
  0x21   : > { %706 = vmatpush.bf16.msra.mxu0 %v1627_v15  ;;  %1023 = vmatpush.bf16.msra.mxu3 %v1680_v14  ;;  %v1679_v15 = vld [vmem:[%s2268_s3 + $0x30] sm:$0xff]  ;;  %v1485_v28 = vld [vmem:[%s1918_s29 + $0xa8] sm:$0xf]  ;;  %v1672_v34 = vld [vmem:[%s1918_s29 + $0xb8] sm:$0xf0] }
  0x22   : > { %755 = vmatpush.bf16.msra.mxu1 %v1635_v16  ;;  %v1473_v16 = vld [vmem:[%s1918_s29 + $0x90] sm:$0xf]  ;;  %v1674_v37 = vld [vmem:[%s2268_s3 + $0x8] sm:$0xff]  ;;  %v2007_v47 = vld [vmem:[%s2267_s2] ss:$0 sm:$0xff] }
  0x23   : > { %804 = vmatpush.bf16.msra.mxu2 %v1643_v17  ;;  %v1668_v17 = vld [vmem:[%s1918_s29 + $0x98] sm:$0xf0]  ;;  %v1675_v29 = vld [vmem:[%s2268_s3 + $0x10] sm:$0xff] }
  0x24   : > { %v1493_v33 = vld [vmem:[%s1918_s29 + $0xb0] sm:$0xf] }
  0x25   : > { %707 = vmatpush.bf16.msra.mxu0 %v1626_v18  ;;  %1024 = vmatpush.bf16.msra.mxu3 %v1679_v15  ;;  %v1667_v18 = vld [vmem:[%s1918_s29 + $0x94] sm:$0xf]  ;;  %v1494_v38 = vor.u32 %v1672_v34, %v1493_v33 }
  0x26   : > { %756 = vmatpush.bf16.msra.mxu1 %v1634_v19  ;;  %v1475_v19 = vld [vmem:[%s1918_s29 + $0x9c] sm:$0xf0] }
  0x27   : > { %805 = vmatpush.bf16.msra.mxu2 %v1642_v20  ;;  %v1481_v20 = vld [vmem:[%s1918_s29 + $0x98] sm:$0xf]  ;;  %v1478_v23 = vor.u32 %v1667_v18, %v1475_v19 }
  0x29   : > { %708 = vmatpush.bf16.msra.mxu0 %v1625_v21  ;;  %v1669_v21 = vld [vmem:[%s1918_s29 + $0xa0] sm:$0xf0]  ;;  %1025 = vmatpush.bf16.msra.mxu3 %v1678_v24 }
  0x2a   : > { %757 = vmatpush.bf16.msra.mxu1 %v1633_v22  ;;  %v1474_v22 = vor.u32 %v1668_v17, %v1473_v16  ;;  %v1482_v25 = vor.u32 %v1669_v21, %v1481_v20 }
  0x2b   : > { %806 = vmatpush.bf16.msra.mxu2 %v1641_v27  ;;  %v1676_v27 = vld [vmem:[%s2268_s3 + $0x18] sm:$0xff] }
  0x2c   : > { %709 = vmatmul.bf16.vlgmr.msra.gmra.mxu0 %v1402_v30  ;;  %v1671_v30 = vld [vmem:[%s1918_s29 + $0xb0] sm:$0xf0] }
  0x2d   : > { %758 = vmatmul.bf16.vlgmr.msra.gmra.mxu1 %v1406_v31  ;;  %1026 = vmatpush.bf16.msra.mxu3 %v1677_v26  ;;  %v1670_v31 = vld [vmem:[%s1918_s29 + $0xac] sm:$0xf]  ;;  %v1486_v35 = vor.u32 %v1671_v30, %v1485_v28 }
  0x2e   : > { %807 = vmatmul.bf16.vlgmr.msra.gmra.mxu2 %v1410_v32  ;;  %v1487_v32 = vld [vmem:[%s1918_s29 + $0xb4] sm:$0xf0] }
  0x2f   : > { %v1490_v36 = vor.u32 %v1670_v31, %v1487_v32 }
  0x31   : > { %1027 = vmatpush.bf16.msra.mxu3 %v1676_v27 }
  0x35   : > { %1028 = vmatpush.bf16.msra.mxu3 %v1675_v29 }
  0x39   : > { %1029 = vmatpush.bf16.msra.mxu3 %v1674_v37 }
  0x3c   : > { %714 = vmatmul.bf16.gmra.mxu0 %v1414_v39  ;;  %v1673_v39 = vld [vmem:[%s2268_s3] sm:$0xff] }
  0x3d   : > { %763 = vmatmul.bf16.gmra.mxu1 %v1418_v40  ;;  %1030 = vmatpush.bf16.msra.mxu3 %v1673_v39 }
  0x3e   : > { %812 = vmatmul.bf16.gmra.mxu2 %v1422_v41 }
  0x4c   : > { %719 = vmatmul.bf16.gmra.mxu0 %v1426_v48 }
  0x4d   : > { %768 = vmatmul.bf16.gmra.mxu1 %v1430_v49 }
  0x4e   : > { %817 = vmatmul.bf16.gmra.mxu2 %v1434_v50 }
  0x5c   : > { %724 = vmatmul.bf16.gmra.mxu0 %v1438_v57 }
  0x5d   : > { %773 = vmatmul.bf16.gmra.mxu1 %v1442_v58 }
  0x5e   : > { %822 = vmatmul.bf16.gmra.mxu2 %v1446_v59 }
  0x6c   : > { %729 = vmatmul.bf16.gmra.mxu0 %v1450_v2 }
  0x6d   : > { %778 = vmatmul.bf16.gmra.mxu1 %v1454_v3 }
  0x6e   : > { %827 = vmatmul.bf16.gmra.mxu2 %v1458_v4 }
  0x7c   : > { %734 = vmatmul.bf16.gmra.mxu0 %v1462_v11 }
  0x7d   : > { %783 = vmatmul.bf16.gmra.mxu1 %v1466_v12 }
  0x7e   : > { %832 = vmatmul.bf16.gmra.mxu2 %v1470_v13 }
  0x8c   : > { %739 = vmatmul.bf16.gmra.mxu0 %v1474_v22 }
  0x8d   : > { %788 = vmatmul.bf16.gmra.mxu1 %v1478_v23 }
  0x8e   : > { %837 = vmatmul.bf16.gmra.mxu2 %v1482_v25 }
  0x9c   : > { %744 = vmatmul.bf16.gmra.mxu0 %v1486_v35 }
  0x9d   : > { %793 = vmatmul.bf16.gmra.mxu1 %v1490_v36 }
  0x9e   : > { %842 = vmatmul.bf16.gmra.mxu2 %v1494_v38 }
  0xa9   : > { %v710_v40 = vpop.f32.mrf.mxu0 }
  0xaa   : > { %v759_v41 = vpop.f32.mrf.mxu1 }
  0xab   : > { %v760_v43 = vadd.f32 %v759_v41, %v710_v40 }
  0xb1   : > { %v808_v42 = vpop.f32.mrf.mxu2  ;;  %v712_v44 = vpop.f32.mrf.mxu0 }
  0xb2   : > { %v761_v45 = vpop.f32.mrf.mxu1  ;;  %v809_v46 = vadd.f32 %v808_v42, %v760_v43 }
  0xb3   : > { %v762_v48 = vadd.f32 %v761_v45, %v712_v44 }
  0xb4   : > { %v903_v50 = vadd.f32 %v2007_v47, %v809_v46 }
  0xb6   : > { %v919_v55 = vmax.f32 %v903_v50, 0.0 }
  0xb9   : > { %v810_v49 = vpop.f32.mrf.mxu2  ;;  %v715_v52 = vpop.f32.mrf.mxu0 }
  0xba   : > { %v811_v51 = vadd.f32 %v810_v49, %v762_v48  ;;  %v764_v53 = vpop.f32.mrf.mxu1 }
  0xbb   : > { %v765_v59 = vadd.f32 %v764_v53, %v715_v52 }
  0xbc   : > { %v904_v54 = vadd.f32 %v2007_v47, %v811_v51 }
  0xbe   : > { %v920_v56 = vmax.f32 %v904_v54, 0.0 }
  0xc0   : > { %v935_v57 = vpack.c.bf16 %v920_v56, %v919_v55 }
  0xc1   : > { %v813_v58 = vpop.f32.mrf.mxu2  ;;  %v717_v60 = vpop.f32.mrf.mxu0 }
  0xc2   : > { %1031 = vmatmul.bf16.vlgmr.msra.gmra.mxu3 %v935_v57  ;;  %v766_v61 = vpop.f32.mrf.mxu1  ;;  %v814_v62 = vadd.f32 %v813_v58, %v765_v59 }
  0xc3   : > { %v767_v63 = vadd.f32 %v766_v61, %v717_v60 }
  0xc4   : > { %v905_v1 = vadd.f32 %v2007_v47, %v814_v62 }
  0xc6   : > { %v921_v6 = vmax.f32 %v905_v1, 0.0 }
  0xc9   : > { %v815_v0 = vpop.f32.mrf.mxu2  ;;  %v720_v3 = vpop.f32.mrf.mxu0 }
  0xca   : > { %v816_v2 = vadd.f32 %v815_v0, %v767_v63  ;;  %v769_v4 = vpop.f32.mrf.mxu1 }
  0xcb   : > { %v770_v10 = vadd.f32 %v769_v4, %v720_v3 }
  0xcc   : > { %v906_v5 = vadd.f32 %v2007_v47, %v816_v2 }
  0xce   : > { %v922_v7 = vmax.f32 %v906_v5, 0.0 }
  0xd0   : > { %v936_v8 = vpack.c.bf16 %v922_v7, %v921_v6 }
  0xd1   : > { %v818_v9 = vpop.f32.mrf.mxu2  ;;  %v722_v11 = vpop.f32.mrf.mxu0 }
  0xd2   : > { %1036 = vmatmul.bf16.gmra.mxu3 %v936_v8  ;;  %v771_v12 = vpop.f32.mrf.mxu1  ;;  %v819_v13 = vadd.f32 %v818_v9, %v770_v10 }
  0xd3   : > { %v772_v14 = vadd.f32 %v771_v12, %v722_v11 }
  0xd4   : > { %v907_v16 = vadd.f32 %v2007_v47, %v819_v13 }
  0xd6   : > { %v923_v21 = vmax.f32 %v907_v16, 0.0 }
  0xd9   : > { %v820_v15 = vpop.f32.mrf.mxu2  ;;  %v725_v18 = vpop.f32.mrf.mxu0 }
  0xda   : > { %v821_v17 = vadd.f32 %v820_v15, %v772_v14  ;;  %v774_v19 = vpop.f32.mrf.mxu1 }
  0xdb   : > { %v775_v25 = vadd.f32 %v774_v19, %v725_v18 }
  0xdc   : > { %v908_v20 = vadd.f32 %v2007_v47, %v821_v17 }
  0xde   : > { %v924_v22 = vmax.f32 %v908_v20, 0.0 }
  0xe0   : > { %v937_v23 = vpack.c.bf16 %v924_v22, %v923_v21 }
  0xe1   : > { %v823_v24 = vpop.f32.mrf.mxu2  ;;  %v727_v26 = vpop.f32.mrf.mxu0 }
  0xe2   : > { %1041 = vmatmul.bf16.gmra.mxu3 %v937_v23  ;;  %v776_v27 = vpop.f32.mrf.mxu1  ;;  %v824_v28 = vadd.f32 %v823_v24, %v775_v25 }
  0xe3   : > { %v777_v29 = vadd.f32 %v776_v27, %v727_v26 }
  0xe4   : > { %v909_v31 = vadd.f32 %v2007_v47, %v824_v28 }
  0xe6   : > { %v925_v36 = vmax.f32 %v909_v31, 0.0 }
  0xe9   : > { %v825_v30 = vpop.f32.mrf.mxu2  ;;  %v730_v33 = vpop.f32.mrf.mxu0 }
  0xea   : > { %v826_v32 = vadd.f32 %v825_v30, %v777_v29  ;;  %v779_v34 = vpop.f32.mrf.mxu1 }
  0xeb   : > { %v780_v40 = vadd.f32 %v779_v34, %v730_v33  ;;  %v1108_v34 = vlaneseq }
  0xec   : > { %v910_v35 = vadd.f32 %v2007_v47, %v826_v32 }
  0xee   : > { %v926_v37 = vmax.f32 %v910_v35, 0.0  ;;  %v943_v35 = vld [vmem:[%s2031_s14] sm:$0xff] }
  0xf0   : > { %v938_v38 = vpack.c.bf16 %v926_v37, %v925_v36  ;;  %v2034_v36 = vand.u32 127, %v1108_v34 }
  0xf1   : > { %v828_v39 = vpop.f32.mrf.mxu2  ;;  %v732_v41 = vpop.f32.mrf.mxu0 }
  0xf2   : > { %1046 = vmatmul.bf16.gmra.mxu3 %v938_v38  ;;  %v781_v42 = vpop.f32.mrf.mxu1  ;;  %v829_v43 = vadd.f32 %v828_v39, %v780_v40  ;;  %vm1110_vm0 = vcmp.lt.s32.totalorder %v2034_v36, 7 }
  0xf3   : > { %v782_v44 = vadd.f32 %v781_v42, %v732_v41  ;;  %v944_v41 = vld [vmem:[%s2031_s14 + $0x8] sm:$0xff] }
  0xf4   : > { %v911_v46 = vadd.f32 %v2007_v47, %v829_v43 }
  0xf6   : > { %v927_v52 = vmax.f32 %v911_v46, 0.0  ;;  %v945_v46 = vld [vmem:[%s2031_s14 + $0x10] sm:$0xff] }
  0xf9   : > { %v830_v45 = vpop.f32.mrf.mxu2  ;;  %v735_v49 = vpop.f32.mrf.mxu0 }
  0xfa   : > { %v831_v48 = vadd.f32 %v830_v45, %v782_v44  ;;  %v784_v50 = vpop.f32.mrf.mxu1 }
  0xfb   : > { %v785_v56 = vadd.f32 %v784_v50, %v735_v49 }
  0xfc   : > { %v912_v51 = vadd.f32 %v2007_v47, %v831_v48 }
  0xfe   : > { %v928_v53 = vmax.f32 %v912_v51, 0.0 }
 0x100   : > { %v939_v54 = vpack.c.bf16 %v928_v53, %v927_v52  ;;  %v946_v52 = vld [vmem:[%s2031_s14 + $0x18] sm:$0xff] }
 0x101   : > { %v833_v55 = vpop.f32.mrf.mxu2  ;;  %v737_v57 = vpop.f32.mrf.mxu0 }
 0x102   : > { %1051 = vmatmul.bf16.gmra.mxu3 %v939_v54  ;;  %v786_v58 = vpop.f32.mrf.mxu1  ;;  %v834_v59 = vadd.f32 %v833_v55, %v785_v56 }
 0x103   : > { %v787_v60 = vadd.f32 %v786_v58, %v737_v57  ;;  %v947_v57 = vld [vmem:[%s2031_s14 + $0x20] sm:$0xff] }
 0x104   : > { %v913_v62 = vadd.f32 %v2007_v47, %v834_v59 }
 0x106   : > { %v929_v3 = vmax.f32 %v913_v62, 0.0  ;;  %v948_v62 = vld [vmem:[%s2031_s14 + $0x28] sm:$0xff] }
 0x109   : > { %v835_v61 = vpop.f32.mrf.mxu2  ;;  %v740_v0 = vpop.f32.mrf.mxu0 }
 0x10a   : > { %v836_v63 = vadd.f32 %v835_v61, %v787_v60  ;;  %v789_v1 = vpop.f32.mrf.mxu1 }
 0x10b   : > { %v790_v7 = vadd.f32 %v789_v1, %v740_v0 }
 0x10c   : > { %v914_v2 = vadd.f32 %v2007_v47, %v836_v63 }
 0x10e   : > { %v930_v4 = vmax.f32 %v914_v2, 0.0 }
 0x110   : > { %v940_v5 = vpack.c.bf16 %v930_v4, %v929_v3  ;;  %v949_v3 = vld [vmem:[%s2031_s14 + $0x30] sm:$0xff] }
 0x111   : > { %v838_v6 = vpop.f32.mrf.mxu2  ;;  %v742_v8 = vpop.f32.mrf.mxu0 }
 0x112   : > { %1056 = vmatmul.bf16.gmra.mxu3 %v940_v5  ;;  %v791_v9 = vpop.f32.mrf.mxu1  ;;  %v839_v10 = vadd.f32 %v838_v6, %v790_v7 }
 0x113   : > { %v792_v11 = vadd.f32 %v791_v9, %v742_v8  ;;  %v950_v8 = vld [vmem:[%s2031_s14 + $0x38] sm:$0xff] }
 0x114   : > { %v915_v13 = vadd.f32 %v2007_v47, %v839_v10 }
 0x116   : > { %v931_v18 = vmax.f32 %v915_v13, 0.0  ;;  %v951_v13 = vld [vmem:[%s2031_s14 + $0x40] sm:$0xff] }
 0x119   : > { %v840_v12 = vpop.f32.mrf.mxu2  ;;  %v745_v15 = vpop.f32.mrf.mxu0 }
 0x11a   : > { %v841_v14 = vadd.f32 %v840_v12, %v792_v11  ;;  %v794_v16 = vpop.f32.mrf.mxu1 }
 0x11b   : > { %v795_v22 = vadd.f32 %v794_v16, %v745_v15 }
 0x11c   : > { %v916_v17 = vadd.f32 %v2007_v47, %v841_v14 }
 0x11e   : > { %v932_v19 = vmax.f32 %v916_v17, 0.0 }
 0x120   : > { %v941_v20 = vpack.c.bf16 %v932_v19, %v931_v18  ;;  %v952_v18 = vld [vmem:[%s2031_s14 + $0x48] sm:$0xff] }
 0x121   : > { %v843_v21 = vpop.f32.mrf.mxu2  ;;  %v747_v23 = vpop.f32.mrf.mxu0 }
 0x122   : > { %1061 = vmatmul.bf16.gmra.mxu3 %v941_v20  ;;  %v796_v24 = vpop.f32.mrf.mxu1  ;;  %v844_v25 = vadd.f32 %v843_v21, %v795_v22 }
 0x123   : > { %v797_v26 = vadd.f32 %v796_v24, %v747_v23  ;;  %v953_v23 = vld [vmem:[%s2031_s14 + $0x50] sm:$0xff] }
 0x124   : > { %v917_v28 = vadd.f32 %v2007_v47, %v844_v25 }
 0x126   : > { %v933_v31 = vmax.f32 %v917_v28, 0.0  ;;  %v954_v28 = vld [vmem:[%s2031_s14 + $0x58] sm:$0xff] }
 0x129   : > { %v845_v27 = vpop.f32.mrf.mxu2 }
 0x12a   : > { %v846_v29 = vadd.f32 %v845_v27, %v797_v26 }
 0x12c   : > { %v918_v30 = vadd.f32 %v2007_v47, %v846_v29  ;;  %v2039_v47 = vld [vmem:[%s2270_s5] ss:$0 sm:$0xff] }
 0x12e   : > { %v934_v32 = vmax.f32 %v918_v30, 0.0 }
 0x130   : > { %v942_v33 = vpack.c.bf16 %v934_v32, %v933_v31 }
 0x132   : > { %1066 = vmatmul.bf16.gmra.mxu3 %v942_v33  ;;  %v955_v33 = vld [vmem:[%s2031_s14 + $0x60] sm:$0xff] }
 0x145   : > { %v1032_v37 = vpop.f32.mrf.mxu3 }
 0x146   : > { %v1072_v38 = vadd.f32 %v1032_v37, %v943_v35 }
 0x148   : > { %v1092_v39 = vadd.f32 %v2039_v47, %v1072_v38 }
 0x14a   : > { %v2045_v40 = vsel %vm1110_vm0, %v1092_v39, -1e+30  ;;  %v956_v39 = vld [vmem:[%s2031_s14 + $0x68] sm:$0xff] }
 0x14b   : > { %1127 = vmax.xlane.f32.xlu0 %v2045_v40 }
 0x14d   : > { %v1034_v42 = vpop.f32.mrf.mxu3 }
 0x14e   : > { %v1073_v43 = vadd.f32 %v1034_v42, %v944_v41 }
 0x150   : > { %v1093_v44 = vadd.f32 %v2039_v47, %v1073_v43 }
 0x152   : > { %v2052_v45 = vsel %vm1110_vm0, %v1093_v44, -1e+30 }
 0x153   : > { %1129 = vmax.xlane.f32.xlu0 %v2052_v45 }
 0x155   : > { %v1037_v48 = vpop.f32.mrf.mxu3 }
 0x156   : > { %v1074_v49 = vadd.f32 %v1037_v48, %v945_v46  ;;  %v957_v46 = vld [vmem:[%s2031_s14 + $0x70] sm:$0xff] }
 0x158   : > { %v1094_v50 = vadd.f32 %v2039_v47, %v1074_v49 }
 0x15a   : > { %v2059_v51 = vsel %vm1110_vm0, %v1094_v50, -1e+30 }
 0x15b   : > { %1131 = vmax.xlane.f32.xlu1 %v2059_v51 }
 0x15d   : > { %v1039_v53 = vpop.f32.mrf.mxu3 }
 0x15e   : > { %v1075_v54 = vadd.f32 %v1039_v53, %v946_v52  ;;  %v958_v53 = vld [vmem:[%s2031_s14 + $0x78] sm:$0xff] }
 0x160   : > { %v1095_v55 = vadd.f32 %v2039_v47, %v1075_v54 }
 0x162   : > { %v2066_v56 = vsel %vm1110_vm0, %v1095_v55, -1e+30 }
 0x163   : > { %1133 = vmax.xlane.f32.xlu1 %v2066_v56 }
 0x165   : > { %v1042_v58 = vpop.f32.mrf.mxu3 }
 0x166   : > { %v1076_v59 = vadd.f32 %v1042_v58, %v947_v57 }
 0x168   : > { %v1096_v60 = vadd.f32 %v2039_v47, %v1076_v59 }
 0x16a   : > { %v2073_v61 = vsel %vm1110_vm0, %v1096_v60, -1e+30 }
 0x16b   : > { %1135 = vmax.xlane.f32.xlu2 %v2073_v61 }
 0x16d   : > { %v1044_v63 = vpop.f32.mrf.mxu3 }
 0x16e   : > { %v1077_v0 = vadd.f32 %v1044_v63, %v948_v62 }
 0x170   : > { %v1097_v1 = vadd.f32 %v2039_v47, %v1077_v0 }
 0x172   : > { %v2080_v2 = vsel %vm1110_vm0, %v1097_v1, -1e+30 }
 0x173   : > { %1137 = vmax.xlane.f32.xlu2 %v2080_v2 }
 0x175   : > { %v1047_v4 = vpop.f32.mrf.mxu3 }
 0x176   : > { %v1078_v5 = vadd.f32 %v1047_v4, %v949_v3 }
 0x178   : > { %v1098_v6 = vadd.f32 %v2039_v47, %v1078_v5 }
 0x17a   : > { %v2087_v7 = vsel %vm1110_vm0, %v1098_v6, -1e+30 }
 0x17b   : > { %1139 = vmax.xlane.f32.xlu0 %v2087_v7 }
 0x17d   : > { %v1049_v9 = vpop.f32.mrf.mxu3 }
 0x17e   : > { %v1079_v10 = vadd.f32 %v1049_v9, %v950_v8 }
 0x180   : > { %v1099_v11 = vadd.f32 %v2039_v47, %v1079_v10 }
 0x182   : > { %v2094_v12 = vsel %vm1110_vm0, %v1099_v11, -1e+30 }
 0x183   : > { %1141 = vmax.xlane.f32.xlu1 %v2094_v12 }
 0x185   : > { %v1052_v14 = vpop.f32.mrf.mxu3 }
 0x186   : > { %v1080_v15 = vadd.f32 %v1052_v14, %v951_v13 }
 0x188   : > { %v1100_v16 = vadd.f32 %v2039_v47, %v1080_v15 }
 0x18a   : > { %v2101_v17 = vsel %vm1110_vm0, %v1100_v16, -1e+30 }
 0x18b   : > { %1143 = vmax.xlane.f32.xlu2 %v2101_v17 }
 0x18d   : > { %v1054_v19 = vpop.f32.mrf.mxu3 }
 0x18e   : > { %v1081_v20 = vadd.f32 %v1054_v19, %v952_v18 }
 0x190   : > { %v1101_v21 = vadd.f32 %v2039_v47, %v1081_v20 }
 0x192   : > { %v2108_v22 = vsel %vm1110_vm0, %v1101_v21, -1e+30 }
 0x193   : > { %1145 = vmax.xlane.f32.xlu0 %v2108_v22 }
 0x195   : > { %v1057_v24 = vpop.f32.mrf.mxu3 }
 0x196   : > { %v1082_v25 = vadd.f32 %v1057_v24, %v953_v23 }
 0x198   : > { %v1102_v26 = vadd.f32 %v2039_v47, %v1082_v25 }
 0x19a   : > { %v2115_v27 = vsel %vm1110_vm0, %v1102_v26, -1e+30 }
 0x19b   : > { %1147 = vmax.xlane.f32.xlu1 %v2115_v27 }
 0x19d   : > { %v1059_v29 = vpop.f32.mrf.mxu3 }
 0x19e   : > { %v1083_v30 = vadd.f32 %v1059_v29, %v954_v28 }
 0x1a0   : > { %v1103_v31 = vadd.f32 %v2039_v47, %v1083_v30 }
 0x1a2   : > { %v2122_v32 = vsel %vm1110_vm0, %v1103_v31, -1e+30 }
 0x1a3   : > { %1149 = vmax.xlane.f32.xlu2 %v2122_v32 }
 0x1a5   : > { %v1062_v34 = vpop.f32.mrf.mxu3 }
 0x1a6   : > { %v1084_v35 = vadd.f32 %v1062_v34, %v955_v33 }
 0x1a8   : > { %v1104_v37 = vadd.f32 %v2039_v47, %v1084_v35 }
 0x1aa   : > { %v2129_v38 = vsel %vm1110_vm0, %v1104_v37, -1e+30 }
 0x1ab   : > { %1151 = vmax.xlane.f32.xlu0 %v2129_v38 }
 0x1ad   : > { %v1064_v41 = vpop.f32.mrf.mxu3 }
 0x1ae   : > { %v1085_v42 = vadd.f32 %v1064_v41, %v956_v39 }
 0x1b0   : > { %v1105_v43 = vadd.f32 %v2039_v47, %v1085_v42 }
 0x1b2   : > { %v2136_v44 = vsel %vm1110_vm0, %v1105_v43, -1e+30 }
 0x1b3   : > { %1153 = vmax.xlane.f32.xlu1 %v2136_v44 }
 0x1b5   : > { %v1067_v48 = vpop.f32.mrf.mxu3 }
 0x1b6   : > { %v1086_v49 = vadd.f32 %v1067_v48, %v957_v46 }
 0x1b8   : > { %v1106_v50 = vadd.f32 %v2039_v47, %v1086_v49 }
 0x1ba   : > { %v2143_v52 = vsel %vm1110_vm0, %v1106_v50, -1e+30 }
 0x1bb   : > { %1155 = vmax.xlane.f32.xlu2 %v2143_v52 }
 0x1bd   : > { %v1069_v54 = vpop.f32.mrf.mxu3 }
 0x1be   : > { %v1087_v55 = vadd.f32 %v1069_v54, %v958_v53  ;;  %v1128_v57 = vpop.xlane.xlu0 %1127 }
 0x1bf   : > { %v2148_v58 = vsub.f32 %v2045_v40, %v1128_v57 }
 0x1c0   : > { %v1107_v59 = vadd.f32 %v2039_v47, %v1087_v55 }
 0x1c1   : > { %v1175_v60 = vmul.f32 1.442695, %v2148_v58 }
 0x1c2   : > { %v2154_v62 = vsel %vm1110_vm0, %v1107_v59, -1e+30 }
 0x1c3   : > { %1708 = vpow2.f32 %v1175_v60  ;;  %1157 = vmax.xlane.f32.xlu0 %v2154_v62 }
 0x1c6   : > { %v1130_v63 = vpop.xlane.xlu0 %1129 }
 0x1c7   : > { %v2158_v0 = vsub.f32 %v2052_v45, %v1130_v63 }
 0x1c9   : > { %v1709_v1 = vpop.eup %1708  ;;  %v1177_v3 = vmul.f32 1.442695, %v2158_v0 }
 0x1ca   : > { %1207 = vadd.xlane.f32.xlu1 %v1709_v1 }
 0x1cb   : > { %1710 = vpow2.f32 %v1177_v3 }
 0x1ce   : > { %v1132_v40 = vpop.xlane.xlu1 %1131 }
 0x1cf   : > { %v2162_v47 = vsub.f32 %v2059_v51, %v1132_v40 }
 0x1d1   : > { %v1711_v4 = vpop.eup %1710  ;;  %v1179_v36 = vmul.f32 1.442695, %v2162_v47 }
 0x1d2   : > { %1209 = vadd.xlane.f32.xlu2 %v1711_v4 }
 0x1d3   : > { %1712 = vpow2.f32 %v1179_v36 }
 0x1d6   : > { %v1134_v5 = vpop.xlane.xlu1 %1133 }
 0x1d7   : > { %v2166_v6 = vsub.f32 %v2066_v56, %v1134_v5 }
 0x1d9   : > { %v1713_v45 = vpop.eup %1712  ;;  %v1181_v8 = vmul.f32 1.442695, %v2166_v6 }
 0x1da   : > { %1211 = vadd.xlane.f32.xlu0 %v1713_v45 }
 0x1db   : > { %1714 = vpow2.f32 %v1181_v8 }
 0x1de   : > { %v1136_v9 = vpop.xlane.xlu2 %1135 }
 0x1df   : > { %v2170_v10 = vsub.f32 %v2073_v61, %v1136_v9 }
 0x1e1   : > { %v1715_v51 = vpop.eup %1714  ;;  %v1183_v11 = vmul.f32 1.442695, %v2170_v10 }
 0x1e2   : > { %1213 = vadd.xlane.f32.xlu1 %v1715_v51 }
 0x1e3   : > { %1716 = vpow2.f32 %v1183_v11 }
 0x1e6   : > { %v1138_v13 = vpop.xlane.xlu2 %1137 }
 0x1e7   : > { %v2174_v14 = vsub.f32 %v2080_v2, %v1138_v13 }
 0x1e9   : > { %v1717_v56 = vpop.eup %1716  ;;  %v1185_v15 = vmul.f32 1.442695, %v2174_v14 }
 0x1ea   : > { %1215 = vadd.xlane.f32.xlu2 %v1717_v56 }
 0x1eb   : > { %1718 = vpow2.f32 %v1185_v15 }
 0x1ee   : > { %v1140_v16 = vpop.xlane.xlu0 %1139 }
 0x1ef   : > { %v2178_v18 = vsub.f32 %v2087_v7, %v1140_v16 }
 0x1f1   : > { %v1719_v61 = vpop.eup %1718  ;;  %v1187_v19 = vmul.f32 1.442695, %v2178_v18 }
 0x1f2   : > { %1217 = vadd.xlane.f32.xlu0 %v1719_v61 }
 0x1f3   : > { %1720 = vpow2.f32 %v1187_v19 }
 0x1f6   : > { %v1142_v20 = vpop.xlane.xlu1 %1141 }
 0x1f7   : > { %v2182_v21 = vsub.f32 %v2094_v12, %v1142_v20 }
 0x1f9   : > { %v1721_v2 = vpop.eup %1720  ;;  %v1189_v23 = vmul.f32 1.442695, %v2182_v21 }
 0x1fa   : > { %1219 = vadd.xlane.f32.xlu1 %v1721_v2 }
 0x1fb   : > { %1722 = vpow2.f32 %v1189_v23 }
 0x1fe   : > { %v1144_v24 = vpop.xlane.xlu2 %1143 }
 0x1ff   : > { %v2186_v25 = vsub.f32 %v2101_v17, %v1144_v24 }
 0x201   : > { %v1723_v7 = vpop.eup %1722  ;;  %v1191_v26 = vmul.f32 1.442695, %v2186_v25 }
 0x202   : > { %1221 = vadd.xlane.f32.xlu2 %v1723_v7 }
 0x203   : > { %1724 = vpow2.f32 %v1191_v26 }
 0x206   : > { %v1146_v28 = vpop.xlane.xlu0 %1145 }
 0x207   : > { %v2190_v29 = vsub.f32 %v2108_v22, %v1146_v28 }
 0x209   : > { %v1725_v12 = vpop.eup %1724  ;;  %v1193_v30 = vmul.f32 1.442695, %v2190_v29 }
 0x20a   : > { %1223 = vadd.xlane.f32.xlu0 %v1725_v12 }
 0x20b   : > { %1726 = vpow2.f32 %v1193_v30 }
 0x20e   : > { %v1148_v31 = vpop.xlane.xlu1 %1147 }
 0x20f   : > { %v2194_v33 = vsub.f32 %v2115_v27, %v1148_v31 }
 0x211   : > { %v1727_v17 = vpop.eup %1726  ;;  %v1195_v34 = vmul.f32 1.442695, %v2194_v33 }
 0x212   : > { %1225 = vadd.xlane.f32.xlu1 %v1727_v17 }
 0x213   : > { %1728 = vpow2.f32 %v1195_v34 }
 0x216   : > { %v1150_v35 = vpop.xlane.xlu2 %1149 }
 0x217   : > { %v2198_v37 = vsub.f32 %v2122_v32, %v1150_v35 }
 0x219   : > { %v1729_v22 = vpop.eup %1728  ;;  %v1197_v39 = vmul.f32 1.442695, %v2198_v37 }
 0x21a   : > { %1227 = vadd.xlane.f32.xlu2 %v1729_v22 }
 0x21b   : > { %1730 = vpow2.f32 %v1197_v39 }
 0x21e   : > { %v1152_v41 = vpop.xlane.xlu0 %1151 }
 0x21f   : > { %v2202_v42 = vsub.f32 %v2129_v38, %v1152_v41 }
 0x221   : > { %v1731_v27 = vpop.eup %1730  ;;  %v1199_v43 = vmul.f32 1.442695, %v2202_v42 }
 0x222   : > { %1229 = vadd.xlane.f32.xlu0 %v1731_v27 }
 0x223   : > { %1732 = vpow2.f32 %v1199_v43 }
 0x226   : > { %v1154_v46 = vpop.xlane.xlu1 %1153 }
 0x227   : > { %v2206_v48 = vsub.f32 %v2136_v44, %v1154_v46 }
 0x229   : > { %v1733_v32 = vpop.eup %1732  ;;  %v1201_v49 = vmul.f32 1.442695, %v2206_v48 }
 0x22a   : > { %1231 = vadd.xlane.f32.xlu1 %v1733_v32 }
 0x22b   : > { %1734 = vpow2.f32 %v1201_v49 }
 0x22e   : > { %v1156_v50 = vpop.xlane.xlu2 %1155 }
 0x22f   : > { %v2210_v53 = vsub.f32 %v2143_v52, %v1156_v50 }
 0x231   : > { %v1735_v38 = vpop.eup %1734  ;;  %v1203_v54 = vmul.f32 1.442695, %v2210_v53 }
 0x232   : > { %1233 = vadd.xlane.f32.xlu2 %v1735_v38 }
 0x233   : > { %1736 = vpow2.f32 %v1203_v54 }
 0x236   : > { %v1158_v55 = vpop.xlane.xlu0 %1157 }
 0x237   : > { %v2214_v57 = vsub.f32 %v2154_v62, %v1158_v55 }
 0x239   : > { %v1737_v44 = vpop.eup %1736  ;;  %v1205_v59 = vmul.f32 1.442695, %v2214_v57 }
 0x23a   : > { %1235 = vadd.xlane.f32.xlu0 %v1737_v44 }
 0x23b   : > { %1738 = vpow2.f32 %v1205_v59 }
 0x23d   : > { %v1208_v60 = vpop.xlane.xlu1 %1207 }
 0x23e   : > { %1740 = vlog2.f32 %v1208_v60 }
 0x241   : > { %v1739_v63 = vpop.eup %1738 }
 0x242   : > { %1237 = vadd.xlane.f32.xlu1 %v1739_v63 }
 0x244   : > { %v1741_v52 = vpop.eup %1740 }
 0x245   : > { %v1240_v1 = vmul.f32 0.6931472, %v1741_v52  ;;  %v1210_v3 = vpop.xlane.xlu2 %1209 }
 0x246   : > { %1742 = vlog2.f32 %v1210_v3 }
 0x247   : > { %v1271_v62 = vsub.f32 %v2148_v58, %v1240_v1 }
 0x249   : > { %1287 = vst [vmem:[%s2222_s20] sm:$0xff] %v1271_v62 }
 0x24c   : > { %v1743_v40 = vpop.eup %1742 }
 0x24d   : > { %v1242_v4 = vmul.f32 0.6931472, %v1743_v40  ;;  %v1212_v36 = vpop.xlane.xlu0 %1211 }
 0x24e   : > { %1744 = vlog2.f32 %v1212_v36 }
 0x24f   : > { %v1272_v5 = vsub.f32 %v2158_v0, %v1242_v4 }
 0x251   : > { %1288 = vst [vmem:[%s2222_s20 + $0x8] sm:$0xff] %v1272_v5 }
 0x254   : > { %v1745_v45 = vpop.eup %1744 }
 0x255   : > { %v1244_v8 = vmul.f32 0.6931472, %v1745_v45  ;;  %v1214_v9 = vpop.xlane.xlu1 %1213 }
 0x256   : > { %1746 = vlog2.f32 %v1214_v9 }
 0x257   : > { %v1273_v51 = vsub.f32 %v2162_v47, %v1244_v8 }
 0x259   : > { %1289 = vst [vmem:[%s2222_s20 + $0x10] sm:$0xff] %v1273_v51 }
 0x25c   : > { %v1747_v11 = vpop.eup %1746 }
 0x25d   : > { %v1246_v13 = vmul.f32 0.6931472, %v1747_v11  ;;  %v1216_v58 = vpop.xlane.xlu2 %1215 }
 0x25e   : > { %1748 = vlog2.f32 %v1216_v58 }
 0x25f   : > { %v1274_v56 = vsub.f32 %v2166_v6, %v1246_v13 }
 0x261   : > { %1290 = vst [vmem:[%s2222_s20 + $0x18] sm:$0xff] %v1274_v56 }
 0x264   : > { %v1749_v15 = vpop.eup %1748 }
 0x265   : > { %v1248_v16 = vmul.f32 0.6931472, %v1749_v15  ;;  %v1218_v0 = vpop.xlane.xlu0 %1217 }
 0x266   : > { %1750 = vlog2.f32 %v1218_v0 }
 0x267   : > { %v1275_v61 = vsub.f32 %v2170_v10, %v1248_v16 }
 0x269   : > { %1291 = vst [vmem:[%s2222_s20 + $0x20] sm:$0xff] %v1275_v61 }
 0x26c   : > { %v1751_v19 = vpop.eup %1750 }
 0x26d   : > { %v1250_v20 = vmul.f32 0.6931472, %v1751_v19  ;;  %v1220_v47 = vpop.xlane.xlu1 %1219 }
 0x26e   : > { %1752 = vlog2.f32 %v1220_v47 }
 0x26f   : > { %v1276_v2 = vsub.f32 %v2174_v14, %v1250_v20 }
 0x271   : > { %1292 = vst [vmem:[%s2222_s20 + $0x28] sm:$0xff] %v1276_v2 }
 0x274   : > { %v1753_v23 = vpop.eup %1752 }
 0x275   : > { %v1252_v24 = vmul.f32 0.6931472, %v1753_v23  ;;  %v1222_v6 = vpop.xlane.xlu2 %1221 }
 0x276   : > { %1754 = vlog2.f32 %v1222_v6 }
 0x277   : > { %v1277_v7 = vsub.f32 %v2178_v18, %v1252_v24 }
 0x279   : > { %1293 = vst [vmem:[%s2222_s20 + $0x30] sm:$0xff] %v1277_v7 }
 0x27c   : > { %v1755_v26 = vpop.eup %1754 }
 0x27d   : > { %v1254_v28 = vmul.f32 0.6931472, %v1755_v26  ;;  %v1224_v10 = vpop.xlane.xlu0 %1223 }
 0x27e   : > { %1756 = vlog2.f32 %v1224_v10 }
 0x27f   : > { %v1278_v12 = vsub.f32 %v2182_v21, %v1254_v28 }
 0x281   : > { %1294 = vst [vmem:[%s2222_s20 + $0x38] sm:$0xff] %v1278_v12 }
 0x284   : > { %v1757_v30 = vpop.eup %1756 }
 0x285   : > { %v1256_v31 = vmul.f32 0.6931472, %v1757_v30  ;;  %v1226_v14 = vpop.xlane.xlu1 %1225 }
 0x286   : > { %1758 = vlog2.f32 %v1226_v14 }
 0x287   : > { %v1279_v17 = vsub.f32 %v2186_v25, %v1256_v31 }
 0x289   : > { %1295 = vst [vmem:[%s2222_s20 + $0x40] sm:$0xff] %v1279_v17 }
 0x28c   : > { %v1759_v34 = vpop.eup %1758 }
 0x28d   : > { %v1258_v35 = vmul.f32 0.6931472, %v1759_v34  ;;  %v1228_v18 = vpop.xlane.xlu2 %1227 }
 0x28e   : > { %1760 = vlog2.f32 %v1228_v18 }
 0x28f   : > { %v1280_v22 = vsub.f32 %v2190_v29, %v1258_v35 }
 0x291   : > { %1296 = vst [vmem:[%s2222_s20 + $0x48] sm:$0xff] %v1280_v22 }
 0x294   : > { %v1761_v39 = vpop.eup %1760 }
 0x295   : > { %v1260_v41 = vmul.f32 0.6931472, %v1761_v39  ;;  %v1230_v21 = vpop.xlane.xlu0 %1229 }
 0x296   : > { %1762 = vlog2.f32 %v1230_v21 }
 0x297   : > { %v1281_v27 = vsub.f32 %v2194_v33, %v1260_v41 }
 0x299   : > { %1297 = vst [vmem:[%s2222_s20 + $0x50] sm:$0xff] %v1281_v27 }
 0x29c   : > { %v1763_v43 = vpop.eup %1762 }
 0x29d   : > { %v1262_v46 = vmul.f32 0.6931472, %v1763_v43  ;;  %v1232_v25 = vpop.xlane.xlu1 %1231 }
 0x29e   : > { %1764 = vlog2.f32 %v1232_v25 }
 0x29f   : > { %v1282_v32 = vsub.f32 %v2198_v37, %v1262_v46 }
 0x2a1   : > { %1298 = vst [vmem:[%s2222_s20 + $0x58] sm:$0xff] %v1282_v32 }
 0x2a4   : > { %v1765_v49 = vpop.eup %1764 }
 0x2a5   : > { %v1264_v50 = vmul.f32 0.6931472, %v1765_v49  ;;  %v1234_v29 = vpop.xlane.xlu2 %1233 }
 0x2a6   : > { %1766 = vlog2.f32 %v1234_v29 }
 0x2a7   : > { %v1283_v38 = vsub.f32 %v2202_v42, %v1264_v50 }
 0x2a9   : > { %1299 = vst [vmem:[%s2222_s20 + $0x60] sm:$0xff] %v1283_v38 }
 0x2ac   : > { %v1767_v54 = vpop.eup %1766 }
 0x2ad   : > { %v1266_v33 = vmul.f32 0.6931472, %v1767_v54  ;;  %v1236_v55 = vpop.xlane.xlu0 %1235 }
 0x2ae   : > { %1768 = vlog2.f32 %v1236_v55 }
 0x2af   : > { %v1284_v44 = vsub.f32 %v2206_v48, %v1266_v33 }
 0x2b1   : > { %1300 = vst [vmem:[%s2222_s20 + $0x68] sm:$0xff] %v1284_v44 }
 0x2b4   : > { %v1769_v59 = vpop.eup %1768 }
 0x2b5   : > { %v1268_v60 = vmul.f32 0.6931472, %v1769_v59  ;;  %v1238_v37 = vpop.xlane.xlu1 %1237 }
 0x2b6   : > { %1770 = vlog2.f32 %v1238_v37 }
 0x2b7   : > { %v1285_v63 = vsub.f32 %v2210_v53, %v1268_v60 }
 0x2b9   : > { %1301 = vst [vmem:[%s2222_s20 + $0x70] sm:$0xff] %v1285_v63 }
 0x2bc   : > { %v1771_v52 = vpop.eup %1770 }
 0x2bd   : > { %v1270_v1 = vmul.f32 0.6931472, %v1771_v52 }
 0x2bf   : > { %v1286_v42 = vsub.f32 %v2214_v57, %v1270_v1 }
 0x2c1   : > { %1302 = vst [vmem:[%s2222_s20 + $0x78] sm:$0xff] %v1286_v42 }
 0x2c2 PF: > { %s16_s23 = sadd.s32 1, %s1794_s23   ;;  %s2272_s21 = smov %s1790_s22 }
 0x2c3   : > { %p13_p5 = scmp.ge.s32.totalorder %s16_s23, 5   ;;  %s2273_s22 = smov %s2275_s24 }
 0x2c5   :  { %15 = sbr.rel (!%p13_p5) target bundleno = 2 (0x2), region = 86 }

</bundles_post_ra>
